<compile_context>
chip_gen: v6e
topology: v6e:2x2x1
jax: 0.10.0
libtpu: 0.0.40
codegen_flags: <defaults>
</compile_context>

<pallas_src>
import math

import jax
import jax.numpy as jnp
from jax import lax
from jax.experimental import pallas as pl
from jax.experimental.pallas import tpu as pltpu  # noqa: F401  (TPU backend)

D_MODEL = 32
D_FF = 64
NUM_HEADS = 4
DEPTH = D_MODEL // NUM_HEADS
EPS = 1e-6
NEG_INF = -1e9


# ------------------------------ fused kernel ------------------------------- #

def _make_decoder_kernel(B, S):
    """Build the fused decoder-layer kernel for static (B, S)."""
    inv_sqrt_depth = 1.0 / math.sqrt(DEPTH)

    def _ln(z, g, b):
        mu = jnp.mean(z, axis=-1, keepdims=True)
        var = jnp.mean(jnp.square(z - mu), axis=-1, keepdims=True)
        return (z - mu) / jnp.sqrt(var + EPS) * g + b

    def _mha_core(q, k, v, bias):
        # q, k, v: (B*S, D_MODEL) lane-dense slabs; bias: (S, S) additive mask.
        # Per-(batch, head) attention, statically unrolled (B*H is tiny); all
        # intermediates live in vregs/VMEM — no per-head HBM layouts.
        rows = []
        for b in range(B):
            qb = q[b * S:(b + 1) * S, :]
            kb = k[b * S:(b + 1) * S, :]
            vb = v[b * S:(b + 1) * S, :]
            head_outs = []
            for h in range(NUM_HEADS):
                qh = qb[:, h * DEPTH:(h + 1) * DEPTH]
                kh = kb[:, h * DEPTH:(h + 1) * DEPTH]
                vh = vb[:, h * DEPTH:(h + 1) * DEPTH]
                # q @ k^T without an explicit transpose: contract last dims.
                s = lax.dot_general(qh, kh, (((1,), (1,)), ((), ())),
                                    preferred_element_type=jnp.float32)
                s = s * inv_sqrt_depth + bias
                s = s - jnp.max(s, axis=-1, keepdims=True)
                p = jnp.exp(s)
                p = p * pl.reciprocal(jnp.sum(p, axis=-1, keepdims=True))
                head_outs.append(
                    jnp.dot(p, vh, preferred_element_type=jnp.float32))
            rows.append(jnp.concatenate(head_outs, axis=-1))   # (S, D_MODEL)
        return jnp.concatenate(rows, axis=0)                   # (B*S, D_MODEL)

    def kernel(x_ref, enc_ref, la_bias_ref, pad_bias_ref,
               sa_wqkv_ref, sa_bqkv_ref, sa_wo_ref, sa_bo_ref,
               ln1_g_ref, ln1_b_ref,
               ca_wqk_ref, ca_bqk_ref, ca_wv_ref, ca_bv_ref,
               ca_wo_ref, ca_bo_ref,
               ln2_g_ref, ln2_b_ref,
               ffn_w1_ref, ffn_b1_ref, ffn_w2_ref, ffn_b2_ref,
               ln3_g_ref, ln3_b_ref,
               o_ref):
        x = x_ref[...]          # (B*S, D_MODEL)
        enc = enc_ref[...]      # (B*S, D_MODEL)

        # ---- self-attention (q = k = v = x); fused QKV projection ----
        qkv = (jnp.dot(x, sa_wqkv_ref[...],
                       preferred_element_type=jnp.float32) + sa_bqkv_ref[...])
        q = qkv[:, :D_MODEL]
        k = qkv[:, D_MODEL:2 * D_MODEL]
        v = qkv[:, 2 * D_MODEL:]
        attn = _mha_core(q, k, v, la_bias_ref[...])
        sa_out = (jnp.dot(attn, sa_wo_ref[...],
                          preferred_element_type=jnp.float32) + sa_bo_ref[...])
        x = _ln(x + sa_out, ln1_g_ref[...], ln1_b_ref[...])

        # ---- cross-attention: module calls cross_attn(x, enc, enc, mask) with
        #      forward(v, k, q, mask)  =>  v = x (decoder state), q = k = enc.
        qk = (jnp.dot(enc, ca_wqk_ref[...],
                      preferred_element_type=jnp.float32) + ca_bqk_ref[...])
        q = qk[:, :D_MODEL]
        k = qk[:, D_MODEL:]
        v = (jnp.dot(x, ca_wv_ref[...],
                     preferred_element_type=jnp.float32) + ca_bv_ref[...])
        attn = _mha_core(q, k, v, pad_bias_ref[...])
        ca_out = (jnp.dot(attn, ca_wo_ref[...],
                          preferred_element_type=jnp.float32) + ca_bo_ref[...])
        x = _ln(x + ca_out, ln2_g_ref[...], ln2_b_ref[...])

        # ---- position-wise FFN (dropout = identity in eval mode) ----
        h = (jnp.dot(x, ffn_w1_ref[...],
                     preferred_element_type=jnp.float32) + ffn_b1_ref[...])
        h = jnp.maximum(h, 0.0)
        ff = (jnp.dot(h, ffn_w2_ref[...],
                      preferred_element_type=jnp.float32) + ffn_b2_ref[...])
        x = _ln(x + ff, ln3_g_ref[...], ln3_b_ref[...])

        o_ref[...] = x

    return kernel


# --------------------------- host-side param prep --------------------------- #

def prepare_fused_params(params):
    """One-time prep: transpose weights to (d_in, d_out) and concat QKV / QK."""
    sa, ca, ffn = params["self_attn"], params["cross_attn"], params["ffn"]

    def t(w):                      # PyTorch (out, in) -> MXU-friendly (in, out)
        return jnp.asarray(w, jnp.float32).T

    def row(b):
        return jnp.asarray(b, jnp.float32).reshape(1, -1)

    return {
        "sa_wqkv": jnp.concatenate([t(sa["wq_w"]), t(sa["wk_w"]), t(sa["wv_w"])], axis=1),
        "sa_bqkv": jnp.concatenate([row(sa["wq_b"]), row(sa["wk_b"]), row(sa["wv_b"])], axis=1),
        "sa_wo": t(sa["dense_w"]), "sa_bo": row(sa["dense_b"]),
        "ln1_g": row(params["ln1_g"]), "ln1_b": row(params["ln1_b"]),
        "ca_wqk": jnp.concatenate([t(ca["wq_w"]), t(ca["wk_w"])], axis=1),
        "ca_bqk": jnp.concatenate([row(ca["wq_b"]), row(ca["wk_b"])], axis=1),
        "ca_wv": t(ca["wv_w"]), "ca_bv": row(ca["wv_b"]),
        "ca_wo": t(ca["dense_w"]), "ca_bo": row(ca["dense_b"]),
        "ln2_g": row(params["ln2_g"]), "ln2_b": row(params["ln2_b"]),
        "ffn_w1": t(ffn["w1"]), "ffn_b1": row(ffn["b1"]),
        "ffn_w2": t(ffn["w2"]), "ffn_b2": row(ffn["b2"]),
        "ln3_g": row(params["ln3_g"]), "ln3_b": row(params["ln3_b"]),
    }


def decoder_layer(fused_params, x, enc_output,
                  look_ahead_mask=None, padding_mask=None):
    B, S, D = x.shape
    assert D == D_MODEL
    assert enc_output.shape == (B, S, D), "reference wiring needs enc_seq == dec_seq"

    def bias_of(mask):
        if mask is None:
            return jnp.zeros((S, S), jnp.float32)
        return jnp.where(mask == 0, jnp.float32(NEG_INF),
                         jnp.float32(0.0)).reshape(S, S)

    la_bias = bias_of(look_ahead_mask)
    pad_bias = bias_of(padding_mask)

    fp = fused_params
    kernel = _make_decoder_kernel(B, S)
    # Single invocation (no grid): the whole working set (<~25 KB) fits VMEM on
    # every TPU generation.  (On v7x a batch-"parallel" grid axis could be
    # added to use the second TensorCore, but at B=2/S=8 it is pure overhead.)
    out = pl.pallas_call(
        kernel,
        out_shape=jax.ShapeDtypeStruct((B * S, D_MODEL), jnp.float32),
    )(
        x.reshape(B * S, D_MODEL), enc_output.reshape(B * S, D_MODEL),
        la_bias, pad_bias,
        fp["sa_wqkv"], fp["sa_bqkv"], fp["sa_wo"], fp["sa_bo"],
        fp["ln1_g"], fp["ln1_b"],
        fp["ca_wqk"], fp["ca_bqk"], fp["ca_wv"], fp["ca_bv"],
        fp["ca_wo"], fp["ca_bo"],
        fp["ln2_g"], fp["ln2_b"],
        fp["ffn_w1"], fp["ffn_b1"], fp["ffn_w2"], fp["ffn_b2"],
        fp["ln3_g"], fp["ln3_b"],
    )
    return out.reshape(B, S, D_MODEL)


# ------------------------------ reference (JAX) ----------------------------- #

def _ref_mha(p, v, k, q, mask):
    B, Sq, _ = q.shape
    Sk, Sv = k.shape[1], v.shape[1]
    qp = (q @ p["wq_w"].T + p["wq_b"]).reshape(B, Sq, NUM_HEADS, DEPTH).transpose(0, 2, 1, 3)
    kp = (k @ p["wk_w"].T + p["wk_b"]).reshape(B, Sk, NUM_HEADS, DEPTH).transpose(0, 2, 1, 3)
    vp = (v @ p["wv_w"].T + p["wv_b"]).reshape(B, Sv, NUM_HEADS, DEPTH).transpose(0, 2, 1, 3)
    s = jnp.einsum("bhqd,bhkd->bhqk", qp, kp) / math.sqrt(DEPTH)
    if mask is not None:
        s = jnp.where(mask == 0, -1e9, s)
    a = jax.nn.softmax(s, axis=-1)
    o = jnp.einsum("bhqk,bhkd->bhqd", a, vp).transpose(0, 2, 1, 3).reshape(B, Sq, D_MODEL)
    return o @ p["dense_w"].T + p["dense_b"]


def _ref_ln(z, g, b):
    mu = jnp.mean(z, axis=-1, keepdims=True)
    var = jnp.mean(jnp.square(z - mu), axis=-1, keepdims=True)
    return (z - mu) / jnp.sqrt(var + EPS) * g + b


def _ref_decoder(params, x, enc, lam, pm):
    sa = _ref_mha(params["self_attn"], x, x, x, lam)
    x = _ref_ln(x + sa, params["ln1_g"], params["ln1_b"])
    ca = _ref_mha(params["cross_attn"], x, enc, enc, pm)
    x = _ref_ln(x + ca, params["ln2_g"], params["ln2_b"])
    p = params["ffn"]
    ff = jnp.maximum(x @ p["w1"].T + p["b1"], 0.0) @ p["w2"].T + p["b2"]
    return _ref_ln(x + ff, params["ln3_g"], params["ln3_b"])


# ---------------------------------- main ------------------------------------ #

def _init_params(key):
    keys = iter(jax.random.split(key, 32))

    def nrm(shape, scale=0.05):
        return (scale * jax.random.normal(next(keys), shape)).astype(jnp.float32)

    def mha_params():
        return {
            "wq_w": nrm((D_MODEL, D_MODEL)), "wq_b": nrm((D_MODEL,)),
            "wk_w": nrm((D_MODEL, D_MODEL)), "wk_b": nrm((D_MODEL,)),
            "wv_w": nrm((D_MODEL, D_MODEL)), "wv_b": nrm((D_MODEL,)),
            "dense_w": nrm((D_MODEL, D_MODEL)), "dense_b": nrm((D_MODEL,)),
        }

    return {
        "self_attn": mha_params(),
        "cross_attn": mha_params(),
        "ffn": {
            "w1": nrm((D_FF, D_MODEL)), "b1": nrm((D_FF,)),
            "w2": nrm((D_MODEL, D_FF)), "b2": nrm((D_MODEL,)),
        },
        "ln1_g": jnp.ones((D_MODEL,), jnp.float32), "ln1_b": jnp.zeros((D_MODEL,), jnp.float32),
        "ln2_g": jnp.ones((D_MODEL,), jnp.float32), "ln2_b": jnp.zeros((D_MODEL,), jnp.float32),
        "ln3_g": jnp.ones((D_MODEL,), jnp.float32), "ln3_b": jnp.zeros((D_MODEL,), jnp.float32),
    }


if __name__ == "__main__":
    B, S = 2, 8
    key = jax.random.PRNGKey(0)
    k_p, k_x, k_e = jax.random.split(key, 3)

    params = _init_params(k_p)
    fused = prepare_fused_params(params)        # one-time weight prep

    x = jax.random.normal(k_x, (B, S, D_MODEL), dtype=jnp.float32)
    enc_output = jax.random.normal(k_e, (B, S, D_MODEL), dtype=jnp.float32)
    # causal look-ahead mask (1 = keep, 0 = masked), broadcast over B & H
    look_ahead_mask = jnp.tril(jnp.ones((S, S), dtype=jnp.float32))
    padding_mask = None

    out = decoder_layer(fused, x, enc_output, look_ahead_mask, padding_mask)
    out = jax.block_until_ready(out)

    ref = _ref_decoder(params, x, enc_output, look_ahead_mask, padding_mask)
    assert out.shape == (B, S, D_MODEL)
    assert jnp.allclose(out, ref, atol=1e-4, rtol=1e-4), "Pallas output mismatch vs JAX reference"

    print("KERNEL_OK")
</pallas_src>

<mosaic_0001>
module attributes {stable_mosaic.version = 11 : i64} {
  func.func @kernel(%arg0: memref<16x32xf32, #tpu.memory_space<vmem>>, %arg1: memref<16x32xf32, #tpu.memory_space<vmem>>, %arg2: memref<8x8xf32, #tpu.memory_space<vmem>>, %arg3: memref<8x8xf32, #tpu.memory_space<vmem>>, %arg4: memref<32x96xf32, #tpu.memory_space<vmem>>, %arg5: memref<1x96xf32, #tpu.memory_space<vmem>>, %arg6: memref<32x32xf32, #tpu.memory_space<vmem>>, %arg7: memref<1x32xf32, #tpu.memory_space<vmem>>, %arg8: memref<1x32xf32, #tpu.memory_space<vmem>>, %arg9: memref<1x32xf32, #tpu.memory_space<vmem>>, %arg10: memref<32x64xf32, #tpu.memory_space<vmem>>, %arg11: memref<1x64xf32, #tpu.memory_space<vmem>>, %arg12: memref<32x32xf32, #tpu.memory_space<vmem>>, %arg13: memref<1x32xf32, #tpu.memory_space<vmem>>, %arg14: memref<32x32xf32, #tpu.memory_space<vmem>>, %arg15: memref<1x32xf32, #tpu.memory_space<vmem>>, %arg16: memref<1x32xf32, #tpu.memory_space<vmem>>, %arg17: memref<1x32xf32, #tpu.memory_space<vmem>>, %arg18: memref<32x64xf32, #tpu.memory_space<vmem>>, %arg19: memref<1x64xf32, #tpu.memory_space<vmem>>, %arg20: memref<64x32xf32, #tpu.memory_space<vmem>>, %arg21: memref<1x32xf32, #tpu.memory_space<vmem>>, %arg22: memref<1x32xf32, #tpu.memory_space<vmem>>, %arg23: memref<1x32xf32, #tpu.memory_space<vmem>>, %arg24: memref<16x32xf32, #tpu.memory_space<vmem>>) attributes {dimension_semantics = [], scalar_prefetch = 0 : i64, scratch_operands = 0 : i64, tpu.core_type = #tpu.core_type<tc>} {
    %c0 = arith.constant 0 : index
    %c0_0 = arith.constant 0 : index
    %0 = vector.load %arg0[%c0, %c0_0] : memref<16x32xf32, #tpu.memory_space<vmem>>, vector<16x32xf32>
    %c0_1 = arith.constant 0 : index
    %c0_2 = arith.constant 0 : index
    %1 = vector.load %arg1[%c0_1, %c0_2] : memref<16x32xf32, #tpu.memory_space<vmem>>, vector<16x32xf32>
    %c0_3 = arith.constant 0 : index
    %c0_4 = arith.constant 0 : index
    %2 = vector.load %arg4[%c0_3, %c0_4] : memref<32x96xf32, #tpu.memory_space<vmem>>, vector<32x96xf32>
    %cst = arith.constant dense<0.000000e+00> : vector<16x96xf32>
    %3 = tpu.matmul %0, %2, %cst {dimension_numbers = #tpu.dot_dimension_numbers<[1], [0], [0], [1], [0, 0, 1, 1], [], []>} : vector<16x32xf32>, vector<32x96xf32>, vector<16x96xf32> -> vector<16x96xf32>
    %c0_5 = arith.constant 0 : index
    %c0_6 = arith.constant 0 : index
    %4 = vector.load %arg5[%c0_5, %c0_6] : memref<1x96xf32, #tpu.memory_space<vmem>>, vector<1x96xf32>
    %5 = vector.broadcast %4 : vector<1x96xf32> to vector<16x96xf32>
    %6 = arith.addf %3, %5 : vector<16x96xf32>
    %7 = vector.extract_strided_slice %6 {offsets = [0, 0], sizes = [16, 32], strides = [1, 1]} : vector<16x96xf32> to vector<16x32xf32>
    %8 = vector.extract_strided_slice %6 {offsets = [0, 32], sizes = [16, 32], strides = [1, 1]} : vector<16x96xf32> to vector<16x32xf32>
    %9 = vector.extract_strided_slice %6 {offsets = [0, 64], sizes = [16, 32], strides = [1, 1]} : vector<16x96xf32> to vector<16x32xf32>
    %c0_7 = arith.constant 0 : index
    %c0_8 = arith.constant 0 : index
    %10 = vector.load %arg2[%c0_7, %c0_8] : memref<8x8xf32, #tpu.memory_space<vmem>>, vector<8x8xf32>
    %11 = vector.extract_strided_slice %7 {offsets = [0, 0], sizes = [8, 32], strides = [1, 1]} : vector<16x32xf32> to vector<8x32xf32>
    %12 = vector.extract_strided_slice %8 {offsets = [0, 0], sizes = [8, 32], strides = [1, 1]} : vector<16x32xf32> to vector<8x32xf32>
    %13 = vector.extract_strided_slice %9 {offsets = [0, 0], sizes = [8, 32], strides = [1, 1]} : vector<16x32xf32> to vector<8x32xf32>
    %14 = vector.extract_strided_slice %11 {offsets = [0, 0], sizes = [8, 8], strides = [1, 1]} : vector<8x32xf32> to vector<8x8xf32>
    %15 = vector.extract_strided_slice %12 {offsets = [0, 0], sizes = [8, 8], strides = [1, 1]} : vector<8x32xf32> to vector<8x8xf32>
    %16 = vector.extract_strided_slice %13 {offsets = [0, 0], sizes = [8, 8], strides = [1, 1]} : vector<8x32xf32> to vector<8x8xf32>
    %cst_9 = arith.constant dense<0.000000e+00> : vector<8x8xf32>
    %17 = tpu.matmul %14, %15, %cst_9 {dimension_numbers = #tpu.dot_dimension_numbers<[1], [1], [0], [0], [0, 0, 1, 0], [], []>} : vector<8x8xf32>, vector<8x8xf32>, vector<8x8xf32> -> vector<8x8xf32>
    %cst_10 = arith.constant 0.353553385 : f32
    %18 = vector.broadcast %cst_10 : f32 to vector<8x8xf32>
    %19 = arith.mulf %17, %18 : vector<8x8xf32>
    %20 = arith.addf %19, %10 : vector<8x8xf32>
    %cst_11 = arith.constant dense<0xFF800000> : vector<8xf32>
    %21 = vector.multi_reduction <maximumf>, %20, %cst_11 [1] : vector<8x8xf32> to vector<8xf32>
    %22 = vector.shape_cast %21 : vector<8xf32> to vector<8x1xf32>
    %23 = vector.broadcast %22 : vector<8x1xf32> to vector<8x8xf32>
    %24 = arith.subf %20, %23 : vector<8x8xf32>
    %25 = math.exp %24 : vector<8x8xf32>
    %cst_12 = arith.constant dense<0.000000e+00> : vector<8xf32>
    %26 = vector.multi_reduction <add>, %25, %cst_12 [1] : vector<8x8xf32> to vector<8xf32>
    %27 = vector.shape_cast %26 : vector<8xf32> to vector<8x1xf32>
    %28 = tpu.reciprocal %27 : vector<8x1xf32> -> vector<8x1xf32>
    %29 = vector.broadcast %28 : vector<8x1xf32> to vector<8x8xf32>
    %30 = arith.mulf %25, %29 : vector<8x8xf32>
    %cst_13 = arith.constant dense<0.000000e+00> : vector<8x8xf32>
    %31 = tpu.matmul %30, %16, %cst_13 {dimension_numbers = #tpu.dot_dimension_numbers<[1], [0], [0], [1], [0, 0, 1, 1], [], []>} : vector<8x8xf32>, vector<8x8xf32>, vector<8x8xf32> -> vector<8x8xf32>
    %32 = vector.extract_strided_slice %11 {offsets = [0, 8], sizes = [8, 8], strides = [1, 1]} : vector<8x32xf32> to vector<8x8xf32>
    %33 = vector.extract_strided_slice %12 {offsets = [0, 8], sizes = [8, 8], strides = [1, 1]} : vector<8x32xf32> to vector<8x8xf32>
    %34 = vector.extract_strided_slice %13 {offsets = [0, 8], sizes = [8, 8], strides = [1, 1]} : vector<8x32xf32> to vector<8x8xf32>
    %cst_14 = arith.constant dense<0.000000e+00> : vector<8x8xf32>
    %35 = tpu.matmul %32, %33, %cst_14 {dimension_numbers = #tpu.dot_dimension_numbers<[1], [1], [0], [0], [0, 0, 1, 0], [], []>} : vector<8x8xf32>, vector<8x8xf32>, vector<8x8xf32> -> vector<8x8xf32>
    %cst_15 = arith.constant 0.353553385 : f32
    %36 = vector.broadcast %cst_15 : f32 to vector<8x8xf32>
    %37 = arith.mulf %35, %36 : vector<8x8xf32>
    %38 = arith.addf %37, %10 : vector<8x8xf32>
    %cst_16 = arith.constant dense<0xFF800000> : vector<8xf32>
    %39 = vector.multi_reduction <maximumf>, %38, %cst_16 [1] : vector<8x8xf32> to vector<8xf32>
    %40 = vector.shape_cast %39 : vector<8xf32> to vector<8x1xf32>
    %41 = vector.broadcast %40 : vector<8x1xf32> to vector<8x8xf32>
    %42 = arith.subf %38, %41 : vector<8x8xf32>
    %43 = math.exp %42 : vector<8x8xf32>
    %cst_17 = arith.constant dense<0.000000e+00> : vector<8xf32>
    %44 = vector.multi_reduction <add>, %43, %cst_17 [1] : vector<8x8xf32> to vector<8xf32>
    %45 = vector.shape_cast %44 : vector<8xf32> to vector<8x1xf32>
    %46 = tpu.reciprocal %45 : vector<8x1xf32> -> vector<8x1xf32>
    %47 = vector.broadcast %46 : vector<8x1xf32> to vector<8x8xf32>
    %48 = arith.mulf %43, %47 : vector<8x8xf32>
    %cst_18 = arith.constant dense<0.000000e+00> : vector<8x8xf32>
    %49 = tpu.matmul %48, %34, %cst_18 {dimension_numbers = #tpu.dot_dimension_numbers<[1], [0], [0], [1], [0, 0, 1, 1], [], []>} : vector<8x8xf32>, vector<8x8xf32>, vector<8x8xf32> -> vector<8x8xf32>
    %50 = vector.extract_strided_slice %11 {offsets = [0, 16], sizes = [8, 8], strides = [1, 1]} : vector<8x32xf32> to vector<8x8xf32>
    %51 = vector.extract_strided_slice %12 {offsets = [0, 16], sizes = [8, 8], strides = [1, 1]} : vector<8x32xf32> to vector<8x8xf32>
    %52 = vector.extract_strided_slice %13 {offsets = [0, 16], sizes = [8, 8], strides = [1, 1]} : vector<8x32xf32> to vector<8x8xf32>
    %cst_19 = arith.constant dense<0.000000e+00> : vector<8x8xf32>
    %53 = tpu.matmul %50, %51, %cst_19 {dimension_numbers = #tpu.dot_dimension_numbers<[1], [1], [0], [0], [0, 0, 1, 0], [], []>} : vector<8x8xf32>, vector<8x8xf32>, vector<8x8xf32> -> vector<8x8xf32>
    %cst_20 = arith.constant 0.353553385 : f32
    %54 = vector.broadcast %cst_20 : f32 to vector<8x8xf32>
    %55 = arith.mulf %53, %54 : vector<8x8xf32>
    %56 = arith.addf %55, %10 : vector<8x8xf32>
    %cst_21 = arith.constant dense<0xFF800000> : vector<8xf32>
    %57 = vector.multi_reduction <maximumf>, %56, %cst_21 [1] : vector<8x8xf32> to vector<8xf32>
    %58 = vector.shape_cast %57 : vector<8xf32> to vector<8x1xf32>
    %59 = vector.broadcast %58 : vector<8x1xf32> to vector<8x8xf32>
    %60 = arith.subf %56, %59 : vector<8x8xf32>
    %61 = math.exp %60 : vector<8x8xf32>
    %cst_22 = arith.constant dense<0.000000e+00> : vector<8xf32>
    %62 = vector.multi_reduction <add>, %61, %cst_22 [1] : vector<8x8xf32> to vector<8xf32>
    %63 = vector.shape_cast %62 : vector<8xf32> to vector<8x1xf32>
    %64 = tpu.reciprocal %63 : vector<8x1xf32> -> vector<8x1xf32>
    %65 = vector.broadcast %64 : vector<8x1xf32> to vector<8x8xf32>
    %66 = arith.mulf %61, %65 : vector<8x8xf32>
    %cst_23 = arith.constant dense<0.000000e+00> : vector<8x8xf32>
    %67 = tpu.matmul %66, %52, %cst_23 {dimension_numbers = #tpu.dot_dimension_numbers<[1], [0], [0], [1], [0, 0, 1, 1], [], []>} : vector<8x8xf32>, vector<8x8xf32>, vector<8x8xf32> -> vector<8x8xf32>
    %68 = vector.extract_strided_slice %11 {offsets = [0, 24], sizes = [8, 8], strides = [1, 1]} : vector<8x32xf32> to vector<8x8xf32>
    %69 = vector.extract_strided_slice %12 {offsets = [0, 24], sizes = [8, 8], strides = [1, 1]} : vector<8x32xf32> to vector<8x8xf32>
    %70 = vector.extract_strided_slice %13 {offsets = [0, 24], sizes = [8, 8], strides = [1, 1]} : vector<8x32xf32> to vector<8x8xf32>
    %cst_24 = arith.constant dense<0.000000e+00> : vector<8x8xf32>
    %71 = tpu.matmul %68, %69, %cst_24 {dimension_numbers = #tpu.dot_dimension_numbers<[1], [1], [0], [0], [0, 0, 1, 0], [], []>} : vector<8x8xf32>, vector<8x8xf32>, vector<8x8xf32> -> vector<8x8xf32>
    %cst_25 = arith.constant 0.353553385 : f32
    %72 = vector.broadcast %cst_25 : f32 to vector<8x8xf32>
    %73 = arith.mulf %71, %72 : vector<8x8xf32>
    %74 = arith.addf %73, %10 : vector<8x8xf32>
    %cst_26 = arith.constant dense<0xFF800000> : vector<8xf32>
    %75 = vector.multi_reduction <maximumf>, %74, %cst_26 [1] : vector<8x8xf32> to vector<8xf32>
    %76 = vector.shape_cast %75 : vector<8xf32> to vector<8x1xf32>
    %77 = vector.broadcast %76 : vector<8x1xf32> to vector<8x8xf32>
    %78 = arith.subf %74, %77 : vector<8x8xf32>
    %79 = math.exp %78 : vector<8x8xf32>
    %cst_27 = arith.constant dense<0.000000e+00> : vector<8xf32>
    %80 = vector.multi_reduction <add>, %79, %cst_27 [1] : vector<8x8xf32> to vector<8xf32>
    %81 = vector.shape_cast %80 : vector<8xf32> to vector<8x1xf32>
    %82 = tpu.reciprocal %81 : vector<8x1xf32> -> vector<8x1xf32>
    %83 = vector.broadcast %82 : vector<8x1xf32> to vector<8x8xf32>
    %84 = arith.mulf %79, %83 : vector<8x8xf32>
    %cst_28 = arith.constant dense<0.000000e+00> : vector<8x8xf32>
    %85 = tpu.matmul %84, %70, %cst_28 {dimension_numbers = #tpu.dot_dimension_numbers<[1], [0], [0], [1], [0, 0, 1, 1], [], []>} : vector<8x8xf32>, vector<8x8xf32>, vector<8x8xf32> -> vector<8x8xf32>
    %86 = tpu.concatenate %31, %49, %67, %85 in 1 : vector<8x8xf32>, vector<8x8xf32>, vector<8x8xf32>, vector<8x8xf32> -> vector<8x32xf32>
    %87 = vector.extract_strided_slice %7 {offsets = [8, 0], sizes = [8, 32], strides = [1, 1]} : vector<16x32xf32> to vector<8x32xf32>
    %88 = vector.extract_strided_slice %8 {offsets = [8, 0], sizes = [8, 32], strides = [1, 1]} : vector<16x32xf32> to vector<8x32xf32>
    %89 = vector.extract_strided_slice %9 {offsets = [8, 0], sizes = [8, 32], strides = [1, 1]} : vector<16x32xf32> to vector<8x32xf32>
    %90 = vector.extract_strided_slice %87 {offsets = [0, 0], sizes = [8, 8], strides = [1, 1]} : vector<8x32xf32> to vector<8x8xf32>
    %91 = vector.extract_strided_slice %88 {offsets = [0, 0], sizes = [8, 8], strides = [1, 1]} : vector<8x32xf32> to vector<8x8xf32>
    %92 = vector.extract_strided_slice %89 {offsets = [0, 0], sizes = [8, 8], strides = [1, 1]} : vector<8x32xf32> to vector<8x8xf32>
    %cst_29 = arith.constant dense<0.000000e+00> : vector<8x8xf32>
    %93 = tpu.matmul %90, %91, %cst_29 {dimension_numbers = #tpu.dot_dimension_numbers<[1], [1], [0], [0], [0, 0, 1, 0], [], []>} : vector<8x8xf32>, vector<8x8xf32>, vector<8x8xf32> -> vector<8x8xf32>
    %cst_30 = arith.constant 0.353553385 : f32
    %94 = vector.broadcast %cst_30 : f32 to vector<8x8xf32>
    %95 = arith.mulf %93, %94 : vector<8x8xf32>
    %96 = arith.addf %95, %10 : vector<8x8xf32>
    %cst_31 = arith.constant dense<0xFF800000> : vector<8xf32>
    %97 = vector.multi_reduction <maximumf>, %96, %cst_31 [1] : vector<8x8xf32> to vector<8xf32>
    %98 = vector.shape_cast %97 : vector<8xf32> to vector<8x1xf32>
    %99 = vector.broadcast %98 : vector<8x1xf32> to vector<8x8xf32>
    %100 = arith.subf %96, %99 : vector<8x8xf32>
    %101 = math.exp %100 : vector<8x8xf32>
    %cst_32 = arith.constant dense<0.000000e+00> : vector<8xf32>
    %102 = vector.multi_reduction <add>, %101, %cst_32 [1] : vector<8x8xf32> to vector<8xf32>
    %103 = vector.shape_cast %102 : vector<8xf32> to vector<8x1xf32>
    %104 = tpu.reciprocal %103 : vector<8x1xf32> -> vector<8x1xf32>
    %105 = vector.broadcast %104 : vector<8x1xf32> to vector<8x8xf32>
    %106 = arith.mulf %101, %105 : vector<8x8xf32>
    %cst_33 = arith.constant dense<0.000000e+00> : vector<8x8xf32>
    %107 = tpu.matmul %106, %92, %cst_33 {dimension_numbers = #tpu.dot_dimension_numbers<[1], [0], [0], [1], [0, 0, 1, 1], [], []>} : vector<8x8xf32>, vector<8x8xf32>, vector<8x8xf32> -> vector<8x8xf32>
    %108 = vector.extract_strided_slice %87 {offsets = [0, 8], sizes = [8, 8], strides = [1, 1]} : vector<8x32xf32> to vector<8x8xf32>
    %109 = vector.extract_strided_slice %88 {offsets = [0, 8], sizes = [8, 8], strides = [1, 1]} : vector<8x32xf32> to vector<8x8xf32>
    %110 = vector.extract_strided_slice %89 {offsets = [0, 8], sizes = [8, 8], strides = [1, 1]} : vector<8x32xf32> to vector<8x8xf32>
    %cst_34 = arith.constant dense<0.000000e+00> : vector<8x8xf32>
    %111 = tpu.matmul %108, %109, %cst_34 {dimension_numbers = #tpu.dot_dimension_numbers<[1], [1], [0], [0], [0, 0, 1, 0], [], []>} : vector<8x8xf32>, vector<8x8xf32>, vector<8x8xf32> -> vector<8x8xf32>
    %cst_35 = arith.constant 0.353553385 : f32
    %112 = vector.broadcast %cst_35 : f32 to vector<8x8xf32>
    %113 = arith.mulf %111, %112 : vector<8x8xf32>
    %114 = arith.addf %113, %10 : vector<8x8xf32>
    %cst_36 = arith.constant dense<0xFF800000> : vector<8xf32>
    %115 = vector.multi_reduction <maximumf>, %114, %cst_36 [1] : vector<8x8xf32> to vector<8xf32>
    %116 = vector.shape_cast %115 : vector<8xf32> to vector<8x1xf32>
    %117 = vector.broadcast %116 : vector<8x1xf32> to vector<8x8xf32>
    %118 = arith.subf %114, %117 : vector<8x8xf32>
    %119 = math.exp %118 : vector<8x8xf32>
    %cst_37 = arith.constant dense<0.000000e+00> : vector<8xf32>
    %120 = vector.multi_reduction <add>, %119, %cst_37 [1] : vector<8x8xf32> to vector<8xf32>
    %121 = vector.shape_cast %120 : vector<8xf32> to vector<8x1xf32>
    %122 = tpu.reciprocal %121 : vector<8x1xf32> -> vector<8x1xf32>
    %123 = vector.broadcast %122 : vector<8x1xf32> to vector<8x8xf32>
    %124 = arith.mulf %119, %123 : vector<8x8xf32>
    %cst_38 = arith.constant dense<0.000000e+00> : vector<8x8xf32>
    %125 = tpu.matmul %124, %110, %cst_38 {dimension_numbers = #tpu.dot_dimension_numbers<[1], [0], [0], [1], [0, 0, 1, 1], [], []>} : vector<8x8xf32>, vector<8x8xf32>, vector<8x8xf32> -> vector<8x8xf32>
    %126 = vector.extract_strided_slice %87 {offsets = [0, 16], sizes = [8, 8], strides = [1, 1]} : vector<8x32xf32> to vector<8x8xf32>
    %127 = vector.extract_strided_slice %88 {offsets = [0, 16], sizes = [8, 8], strides = [1, 1]} : vector<8x32xf32> to vector<8x8xf32>
    %128 = vector.extract_strided_slice %89 {offsets = [0, 16], sizes = [8, 8], strides = [1, 1]} : vector<8x32xf32> to vector<8x8xf32>
    %cst_39 = arith.constant dense<0.000000e+00> : vector<8x8xf32>
    %129 = tpu.matmul %126, %127, %cst_39 {dimension_numbers = #tpu.dot_dimension_numbers<[1], [1], [0], [0], [0, 0, 1, 0], [], []>} : vector<8x8xf32>, vector<8x8xf32>, vector<8x8xf32> -> vector<8x8xf32>
    %cst_40 = arith.constant 0.353553385 : f32
    %130 = vector.broadcast %cst_40 : f32 to vector<8x8xf32>
    %131 = arith.mulf %129, %130 : vector<8x8xf32>
    %132 = arith.addf %131, %10 : vector<8x8xf32>
    %cst_41 = arith.constant dense<0xFF800000> : vector<8xf32>
    %133 = vector.multi_reduction <maximumf>, %132, %cst_41 [1] : vector<8x8xf32> to vector<8xf32>
    %134 = vector.shape_cast %133 : vector<8xf32> to vector<8x1xf32>
    %135 = vector.broadcast %134 : vector<8x1xf32> to vector<8x8xf32>
    %136 = arith.subf %132, %135 : vector<8x8xf32>
    %137 = math.exp %136 : vector<8x8xf32>
    %cst_42 = arith.constant dense<0.000000e+00> : vector<8xf32>
    %138 = vector.multi_reduction <add>, %137, %cst_42 [1] : vector<8x8xf32> to vector<8xf32>
    %139 = vector.shape_cast %138 : vector<8xf32> to vector<8x1xf32>
    %140 = tpu.reciprocal %139 : vector<8x1xf32> -> vector<8x1xf32>
    %141 = vector.broadcast %140 : vector<8x1xf32> to vector<8x8xf32>
    %142 = arith.mulf %137, %141 : vector<8x8xf32>
    %cst_43 = arith.constant dense<0.000000e+00> : vector<8x8xf32>
    %143 = tpu.matmul %142, %128, %cst_43 {dimension_numbers = #tpu.dot_dimension_numbers<[1], [0], [0], [1], [0, 0, 1, 1], [], []>} : vector<8x8xf32>, vector<8x8xf32>, vector<8x8xf32> -> vector<8x8xf32>
    %144 = vector.extract_strided_slice %87 {offsets = [0, 24], sizes = [8, 8], strides = [1, 1]} : vector<8x32xf32> to vector<8x8xf32>
    %145 = vector.extract_strided_slice %88 {offsets = [0, 24], sizes = [8, 8], strides = [1, 1]} : vector<8x32xf32> to vector<8x8xf32>
    %146 = vector.extract_strided_slice %89 {offsets = [0, 24], sizes = [8, 8], strides = [1, 1]} : vector<8x32xf32> to vector<8x8xf32>
    %cst_44 = arith.constant dense<0.000000e+00> : vector<8x8xf32>
    %147 = tpu.matmul %144, %145, %cst_44 {dimension_numbers = #tpu.dot_dimension_numbers<[1], [1], [0], [0], [0, 0, 1, 0], [], []>} : vector<8x8xf32>, vector<8x8xf32>, vector<8x8xf32> -> vector<8x8xf32>
    %cst_45 = arith.constant 0.353553385 : f32
    %148 = vector.broadcast %cst_45 : f32 to vector<8x8xf32>
    %149 = arith.mulf %147, %148 : vector<8x8xf32>
    %150 = arith.addf %149, %10 : vector<8x8xf32>
    %cst_46 = arith.constant dense<0xFF800000> : vector<8xf32>
    %151 = vector.multi_reduction <maximumf>, %150, %cst_46 [1] : vector<8x8xf32> to vector<8xf32>
    %152 = vector.shape_cast %151 : vector<8xf32> to vector<8x1xf32>
    %153 = vector.broadcast %152 : vector<8x1xf32> to vector<8x8xf32>
    %154 = arith.subf %150, %153 : vector<8x8xf32>
    %155 = math.exp %154 : vector<8x8xf32>
    %cst_47 = arith.constant dense<0.000000e+00> : vector<8xf32>
    %156 = vector.multi_reduction <add>, %155, %cst_47 [1] : vector<8x8xf32> to vector<8xf32>
    %157 = vector.shape_cast %156 : vector<8xf32> to vector<8x1xf32>
    %158 = tpu.reciprocal %157 : vector<8x1xf32> -> vector<8x1xf32>
    %159 = vector.broadcast %158 : vector<8x1xf32> to vector<8x8xf32>
    %160 = arith.mulf %155, %159 : vector<8x8xf32>
    %cst_48 = arith.constant dense<0.000000e+00> : vector<8x8xf32>
    %161 = tpu.matmul %160, %146, %cst_48 {dimension_numbers = #tpu.dot_dimension_numbers<[1], [0], [0], [1], [0, 0, 1, 1], [], []>} : vector<8x8xf32>, vector<8x8xf32>, vector<8x8xf32> -> vector<8x8xf32>
    %162 = tpu.concatenate %107, %125, %143, %161 in 1 : vector<8x8xf32>, vector<8x8xf32>, vector<8x8xf32>, vector<8x8xf32> -> vector<8x32xf32>
    %163 = tpu.concatenate %86, %162 in 0 : vector<8x32xf32>, vector<8x32xf32> -> vector<16x32xf32>
    %c0_49 = arith.constant 0 : index
    %c0_50 = arith.constant 0 : index
    %164 = vector.load %arg6[%c0_49, %c0_50] : memref<32x32xf32, #tpu.memory_space<vmem>>, vector<32x32xf32>
    %cst_51 = arith.constant dense<0.000000e+00> : vector<16x32xf32>
    %165 = tpu.matmul %163, %164, %cst_51 {dimension_numbers = #tpu.dot_dimension_numbers<[1], [0], [0], [1], [0, 0, 1, 1], [], []>} : vector<16x32xf32>, vector<32x32xf32>, vector<16x32xf32> -> vector<16x32xf32>
    %c0_52 = arith.constant 0 : index
    %c0_53 = arith.constant 0 : index
    %166 = vector.load %arg7[%c0_52, %c0_53] : memref<1x32xf32, #tpu.memory_space<vmem>>, vector<1x32xf32>
    %167 = vector.broadcast %166 : vector<1x32xf32> to vector<16x32xf32>
    %168 = arith.addf %165, %167 : vector<16x32xf32>
    %169 = arith.addf %0, %168 : vector<16x32xf32>
    %c0_54 = arith.constant 0 : index
    %c0_55 = arith.constant 0 : index
    %170 = vector.load %arg8[%c0_54, %c0_55] : memref<1x32xf32, #tpu.memory_space<vmem>>, vector<1x32xf32>
    %c0_56 = arith.constant 0 : index
    %c0_57 = arith.constant 0 : index
    %171 = vector.load %arg9[%c0_56, %c0_57] : memref<1x32xf32, #tpu.memory_space<vmem>>, vector<1x32xf32>
    %cst_58 = arith.constant dense<0.000000e+00> : vector<16xf32>
    %172 = vector.multi_reduction <add>, %169, %cst_58 [1] : vector<16x32xf32> to vector<16xf32>
    %173 = vector.shape_cast %172 : vector<16xf32> to vector<16x1xf32>
    %cst_59 = arith.constant 3.200000e+01 : f32
    %174 = vector.broadcast %cst_59 : f32 to vector<16x1xf32>
    %175 = arith.divf %173, %174 : vector<16x1xf32>
    %176 = vector.broadcast %175 : vector<16x1xf32> to vector<16x32xf32>
    %177 = arith.subf %169, %176 : vector<16x32xf32>
    %178 = arith.mulf %177, %177 : vector<16x32xf32>
    %cst_60 = arith.constant dense<0.000000e+00> : vector<16xf32>
    %179 = vector.multi_reduction <add>, %178, %cst_60 [1] : vector<16x32xf32> to vector<16xf32>
    %180 = vector.shape_cast %179 : vector<16xf32> to vector<16x1xf32>
    %cst_61 = arith.constant 3.200000e+01 : f32
    %181 = vector.broadcast %cst_61 : f32 to vector<16x1xf32>
    %182 = arith.divf %180, %181 : vector<16x1xf32>
    %183 = vector.broadcast %175 : vector<16x1xf32> to vector<16x32xf32>
    %184 = arith.subf %169, %183 : vector<16x32xf32>
    %cst_62 = arith.constant 9.99999997E-7 : f32
    %185 = vector.broadcast %cst_62 : f32 to vector<16x1xf32>
    %186 = arith.addf %182, %185 : vector<16x1xf32>
    %187 = math.sqrt %186 : vector<16x1xf32>
    %188 = vector.broadcast %187 : vector<16x1xf32> to vector<16x32xf32>
    %189 = arith.divf %184, %188 : vector<16x32xf32>
    %190 = vector.broadcast %170 : vector<1x32xf32> to vector<16x32xf32>
    %191 = arith.mulf %189, %190 : vector<16x32xf32>
    %192 = vector.broadcast %171 : vector<1x32xf32> to vector<16x32xf32>
    %193 = arith.addf %191, %192 : vector<16x32xf32>
    %c0_63 = arith.constant 0 : index
    %c0_64 = arith.constant 0 : index
    %194 = vector.load %arg10[%c0_63, %c0_64] : memref<32x64xf32, #tpu.memory_space<vmem>>, vector<32x64xf32>
    %cst_65 = arith.constant dense<0.000000e+00> : vector<16x64xf32>
    %195 = tpu.matmul %1, %194, %cst_65 {dimension_numbers = #tpu.dot_dimension_numbers<[1], [0], [0], [1], [0, 0, 1, 1], [], []>} : vector<16x32xf32>, vector<32x64xf32>, vector<16x64xf32> -> vector<16x64xf32>
    %c0_66 = arith.constant 0 : index
    %c0_67 = arith.constant 0 : index
    %196 = vector.load %arg11[%c0_66, %c0_67] : memref<1x64xf32, #tpu.memory_space<vmem>>, vector<1x64xf32>
    %197 = vector.broadcast %196 : vector<1x64xf32> to vector<16x64xf32>
    %198 = arith.addf %195, %197 : vector<16x64xf32>
    %199 = vector.extract_strided_slice %198 {offsets = [0, 0], sizes = [16, 32], strides = [1, 1]} : vector<16x64xf32> to vector<16x32xf32>
    %200 = vector.extract_strided_slice %198 {offsets = [0, 32], sizes = [16, 32], strides = [1, 1]} : vector<16x64xf32> to vector<16x32xf32>
    %c0_68 = arith.constant 0 : index
    %c0_69 = arith.constant 0 : index
    %201 = vector.load %arg12[%c0_68, %c0_69] : memref<32x32xf32, #tpu.memory_space<vmem>>, vector<32x32xf32>
    %cst_70 = arith.constant dense<0.000000e+00> : vector<16x32xf32>
    %202 = tpu.matmul %193, %201, %cst_70 {dimension_numbers = #tpu.dot_dimension_numbers<[1], [0], [0], [1], [0, 0, 1, 1], [], []>} : vector<16x32xf32>, vector<32x32xf32>, vector<16x32xf32> -> vector<16x32xf32>
    %c0_71 = arith.constant 0 : index
    %c0_72 = arith.constant 0 : index
    %203 = vector.load %arg13[%c0_71, %c0_72] : memref<1x32xf32, #tpu.memory_space<vmem>>, vector<1x32xf32>
    %204 = vector.broadcast %203 : vector<1x32xf32> to vector<16x32xf32>
    %205 = arith.addf %202, %204 : vector<16x32xf32>
    %c0_73 = arith.constant 0 : index
    %c0_74 = arith.constant 0 : index
    %206 = vector.load %arg3[%c0_73, %c0_74] : memref<8x8xf32, #tpu.memory_space<vmem>>, vector<8x8xf32>
    %207 = vector.extract_strided_slice %199 {offsets = [0, 0], sizes = [8, 32], strides = [1, 1]} : vector<16x32xf32> to vector<8x32xf32>
    %208 = vector.extract_strided_slice %200 {offsets = [0, 0], sizes = [8, 32], strides = [1, 1]} : vector<16x32xf32> to vector<8x32xf32>
    %209 = vector.extract_strided_slice %205 {offsets = [0, 0], sizes = [8, 32], strides = [1, 1]} : vector<16x32xf32> to vector<8x32xf32>
    %210 = vector.extract_strided_slice %207 {offsets = [0, 0], sizes = [8, 8], strides = [1, 1]} : vector<8x32xf32> to vector<8x8xf32>
    %211 = vector.extract_strided_slice %208 {offsets = [0, 0], sizes = [8, 8], strides = [1, 1]} : vector<8x32xf32> to vector<8x8xf32>
    %212 = vector.extract_strided_slice %209 {offsets = [0, 0], sizes = [8, 8], strides = [1, 1]} : vector<8x32xf32> to vector<8x8xf32>
    %cst_75 = arith.constant dense<0.000000e+00> : vector<8x8xf32>
    %213 = tpu.matmul %210, %211, %cst_75 {dimension_numbers = #tpu.dot_dimension_numbers<[1], [1], [0], [0], [0, 0, 1, 0], [], []>} : vector<8x8xf32>, vector<8x8xf32>, vector<8x8xf32> -> vector<8x8xf32>
    %cst_76 = arith.constant 0.353553385 : f32
    %214 = vector.broadcast %cst_76 : f32 to vector<8x8xf32>
    %215 = arith.mulf %213, %214 : vector<8x8xf32>
    %216 = arith.addf %215, %206 : vector<8x8xf32>
    %cst_77 = arith.constant dense<0xFF800000> : vector<8xf32>
    %217 = vector.multi_reduction <maximumf>, %216, %cst_77 [1] : vector<8x8xf32> to vector<8xf32>
    %218 = vector.shape_cast %217 : vector<8xf32> to vector<8x1xf32>
    %219 = vector.broadcast %218 : vector<8x1xf32> to vector<8x8xf32>
    %220 = arith.subf %216, %219 : vector<8x8xf32>
    %221 = math.exp %220 : vector<8x8xf32>
    %cst_78 = arith.constant dense<0.000000e+00> : vector<8xf32>
    %222 = vector.multi_reduction <add>, %221, %cst_78 [1] : vector<8x8xf32> to vector<8xf32>
    %223 = vector.shape_cast %222 : vector<8xf32> to vector<8x1xf32>
    %224 = tpu.reciprocal %223 : vector<8x1xf32> -> vector<8x1xf32>
    %225 = vector.broadcast %224 : vector<8x1xf32> to vector<8x8xf32>
    %226 = arith.mulf %221, %225 : vector<8x8xf32>
    %cst_79 = arith.constant dense<0.000000e+00> : vector<8x8xf32>
    %227 = tpu.matmul %226, %212, %cst_79 {dimension_numbers = #tpu.dot_dimension_numbers<[1], [0], [0], [1], [0, 0, 1, 1], [], []>} : vector<8x8xf32>, vector<8x8xf32>, vector<8x8xf32> -> vector<8x8xf32>
    %228 = vector.extract_strided_slice %207 {offsets = [0, 8], sizes = [8, 8], strides = [1, 1]} : vector<8x32xf32> to vector<8x8xf32>
    %229 = vector.extract_strided_slice %208 {offsets = [0, 8], sizes = [8, 8], strides = [1, 1]} : vector<8x32xf32> to vector<8x8xf32>
    %230 = vector.extract_strided_slice %209 {offsets = [0, 8], sizes = [8, 8], strides = [1, 1]} : vector<8x32xf32> to vector<8x8xf32>
    %cst_80 = arith.constant dense<0.000000e+00> : vector<8x8xf32>
    %231 = tpu.matmul %228, %229, %cst_80 {dimension_numbers = #tpu.dot_dimension_numbers<[1], [1], [0], [0], [0, 0, 1, 0], [], []>} : vector<8x8xf32>, vector<8x8xf32>, vector<8x8xf32> -> vector<8x8xf32>
    %cst_81 = arith.constant 0.353553385 : f32
    %232 = vector.broadcast %cst_81 : f32 to vector<8x8xf32>
    %233 = arith.mulf %231, %232 : vector<8x8xf32>
    %234 = arith.addf %233, %206 : vector<8x8xf32>
    %cst_82 = arith.constant dense<0xFF800000> : vector<8xf32>
    %235 = vector.multi_reduction <maximumf>, %234, %cst_82 [1] : vector<8x8xf32> to vector<8xf32>
    %236 = vector.shape_cast %235 : vector<8xf32> to vector<8x1xf32>
    %237 = vector.broadcast %236 : vector<8x1xf32> to vector<8x8xf32>
    %238 = arith.subf %234, %237 : vector<8x8xf32>
    %239 = math.exp %238 : vector<8x8xf32>
    %cst_83 = arith.constant dense<0.000000e+00> : vector<8xf32>
    %240 = vector.multi_reduction <add>, %239, %cst_83 [1] : vector<8x8xf32> to vector<8xf32>
    %241 = vector.shape_cast %240 : vector<8xf32> to vector<8x1xf32>
    %242 = tpu.reciprocal %241 : vector<8x1xf32> -> vector<8x1xf32>
    %243 = vector.broadcast %242 : vector<8x1xf32> to vector<8x8xf32>
    %244 = arith.mulf %239, %243 : vector<8x8xf32>
    %cst_84 = arith.constant dense<0.000000e+00> : vector<8x8xf32>
    %245 = tpu.matmul %244, %230, %cst_84 {dimension_numbers = #tpu.dot_dimension_numbers<[1], [0], [0], [1], [0, 0, 1, 1], [], []>} : vector<8x8xf32>, vector<8x8xf32>, vector<8x8xf32> -> vector<8x8xf32>
    %246 = vector.extract_strided_slice %207 {offsets = [0, 16], sizes = [8, 8], strides = [1, 1]} : vector<8x32xf32> to vector<8x8xf32>
    %247 = vector.extract_strided_slice %208 {offsets = [0, 16], sizes = [8, 8], strides = [1, 1]} : vector<8x32xf32> to vector<8x8xf32>
    %248 = vector.extract_strided_slice %209 {offsets = [0, 16], sizes = [8, 8], strides = [1, 1]} : vector<8x32xf32> to vector<8x8xf32>
    %cst_85 = arith.constant dense<0.000000e+00> : vector<8x8xf32>
    %249 = tpu.matmul %246, %247, %cst_85 {dimension_numbers = #tpu.dot_dimension_numbers<[1], [1], [0], [0], [0, 0, 1, 0], [], []>} : vector<8x8xf32>, vector<8x8xf32>, vector<8x8xf32> -> vector<8x8xf32>
    %cst_86 = arith.constant 0.353553385 : f32
    %250 = vector.broadcast %cst_86 : f32 to vector<8x8xf32>
    %251 = arith.mulf %249, %250 : vector<8x8xf32>
    %252 = arith.addf %251, %206 : vector<8x8xf32>
    %cst_87 = arith.constant dense<0xFF800000> : vector<8xf32>
    %253 = vector.multi_reduction <maximumf>, %252, %cst_87 [1] : vector<8x8xf32> to vector<8xf32>
    %254 = vector.shape_cast %253 : vector<8xf32> to vector<8x1xf32>
    %255 = vector.broadcast %254 : vector<8x1xf32> to vector<8x8xf32>
    %256 = arith.subf %252, %255 : vector<8x8xf32>
    %257 = math.exp %256 : vector<8x8xf32>
    %cst_88 = arith.constant dense<0.000000e+00> : vector<8xf32>
    %258 = vector.multi_reduction <add>, %257, %cst_88 [1] : vector<8x8xf32> to vector<8xf32>
    %259 = vector.shape_cast %258 : vector<8xf32> to vector<8x1xf32>
    %260 = tpu.reciprocal %259 : vector<8x1xf32> -> vector<8x1xf32>
    %261 = vector.broadcast %260 : vector<8x1xf32> to vector<8x8xf32>
    %262 = arith.mulf %257, %261 : vector<8x8xf32>
    %cst_89 = arith.constant dense<0.000000e+00> : vector<8x8xf32>
    %263 = tpu.matmul %262, %248, %cst_89 {dimension_numbers = #tpu.dot_dimension_numbers<[1], [0], [0], [1], [0, 0, 1, 1], [], []>} : vector<8x8xf32>, vector<8x8xf32>, vector<8x8xf32> -> vector<8x8xf32>
    %264 = vector.extract_strided_slice %207 {offsets = [0, 24], sizes = [8, 8], strides = [1, 1]} : vector<8x32xf32> to vector<8x8xf32>
    %265 = vector.extract_strided_slice %208 {offsets = [0, 24], sizes = [8, 8], strides = [1, 1]} : vector<8x32xf32> to vector<8x8xf32>
    %266 = vector.extract_strided_slice %209 {offsets = [0, 24], sizes = [8, 8], strides = [1, 1]} : vector<8x32xf32> to vector<8x8xf32>
    %cst_90 = arith.constant dense<0.000000e+00> : vector<8x8xf32>
    %267 = tpu.matmul %264, %265, %cst_90 {dimension_numbers = #tpu.dot_dimension_numbers<[1], [1], [0], [0], [0, 0, 1, 0], [], []>} : vector<8x8xf32>, vector<8x8xf32>, vector<8x8xf32> -> vector<8x8xf32>
    %cst_91 = arith.constant 0.353553385 : f32
    %268 = vector.broadcast %cst_91 : f32 to vector<8x8xf32>
    %269 = arith.mulf %267, %268 : vector<8x8xf32>
    %270 = arith.addf %269, %206 : vector<8x8xf32>
    %cst_92 = arith.constant dense<0xFF800000> : vector<8xf32>
    %271 = vector.multi_reduction <maximumf>, %270, %cst_92 [1] : vector<8x8xf32> to vector<8xf32>
    %272 = vector.shape_cast %271 : vector<8xf32> to vector<8x1xf32>
    %273 = vector.broadcast %272 : vector<8x1xf32> to vector<8x8xf32>
    %274 = arith.subf %270, %273 : vector<8x8xf32>
    %275 = math.exp %274 : vector<8x8xf32>
    %cst_93 = arith.constant dense<0.000000e+00> : vector<8xf32>
    %276 = vector.multi_reduction <add>, %275, %cst_93 [1] : vector<8x8xf32> to vector<8xf32>
    %277 = vector.shape_cast %276 : vector<8xf32> to vector<8x1xf32>
    %278 = tpu.reciprocal %277 : vector<8x1xf32> -> vector<8x1xf32>
    %279 = vector.broadcast %278 : vector<8x1xf32> to vector<8x8xf32>
    %280 = arith.mulf %275, %279 : vector<8x8xf32>
    %cst_94 = arith.constant dense<0.000000e+00> : vector<8x8xf32>
    %281 = tpu.matmul %280, %266, %cst_94 {dimension_numbers = #tpu.dot_dimension_numbers<[1], [0], [0], [1], [0, 0, 1, 1], [], []>} : vector<8x8xf32>, vector<8x8xf32>, vector<8x8xf32> -> vector<8x8xf32>
    %282 = tpu.concatenate %227, %245, %263, %281 in 1 : vector<8x8xf32>, vector<8x8xf32>, vector<8x8xf32>, vector<8x8xf32> -> vector<8x32xf32>
    %283 = vector.extract_strided_slice %199 {offsets = [8, 0], sizes = [8, 32], strides = [1, 1]} : vector<16x32xf32> to vector<8x32xf32>
    %284 = vector.extract_strided_slice %200 {offsets = [8, 0], sizes = [8, 32], strides = [1, 1]} : vector<16x32xf32> to vector<8x32xf32>
    %285 = vector.extract_strided_slice %205 {offsets = [8, 0], sizes = [8, 32], strides = [1, 1]} : vector<16x32xf32> to vector<8x32xf32>
    %286 = vector.extract_strided_slice %283 {offsets = [0, 0], sizes = [8, 8], strides = [1, 1]} : vector<8x32xf32> to vector<8x8xf32>
    %287 = vector.extract_strided_slice %284 {offsets = [0, 0], sizes = [8, 8], strides = [1, 1]} : vector<8x32xf32> to vector<8x8xf32>
    %288 = vector.extract_strided_slice %285 {offsets = [0, 0], sizes = [8, 8], strides = [1, 1]} : vector<8x32xf32> to vector<8x8xf32>
    %cst_95 = arith.constant dense<0.000000e+00> : vector<8x8xf32>
    %289 = tpu.matmul %286, %287, %cst_95 {dimension_numbers = #tpu.dot_dimension_numbers<[1], [1], [0], [0], [0, 0, 1, 0], [], []>} : vector<8x8xf32>, vector<8x8xf32>, vector<8x8xf32> -> vector<8x8xf32>
    %cst_96 = arith.constant 0.353553385 : f32
    %290 = vector.broadcast %cst_96 : f32 to vector<8x8xf32>
    %291 = arith.mulf %289, %290 : vector<8x8xf32>
    %292 = arith.addf %291, %206 : vector<8x8xf32>
    %cst_97 = arith.constant dense<0xFF800000> : vector<8xf32>
    %293 = vector.multi_reduction <maximumf>, %292, %cst_97 [1] : vector<8x8xf32> to vector<8xf32>
    %294 = vector.shape_cast %293 : vector<8xf32> to vector<8x1xf32>
    %295 = vector.broadcast %294 : vector<8x1xf32> to vector<8x8xf32>
    %296 = arith.subf %292, %295 : vector<8x8xf32>
    %297 = math.exp %296 : vector<8x8xf32>
    %cst_98 = arith.constant dense<0.000000e+00> : vector<8xf32>
    %298 = vector.multi_reduction <add>, %297, %cst_98 [1] : vector<8x8xf32> to vector<8xf32>
    %299 = vector.shape_cast %298 : vector<8xf32> to vector<8x1xf32>
    %300 = tpu.reciprocal %299 : vector<8x1xf32> -> vector<8x1xf32>
    %301 = vector.broadcast %300 : vector<8x1xf32> to vector<8x8xf32>
    %302 = arith.mulf %297, %301 : vector<8x8xf32>
    %cst_99 = arith.constant dense<0.000000e+00> : vector<8x8xf32>
    %303 = tpu.matmul %302, %288, %cst_99 {dimension_numbers = #tpu.dot_dimension_numbers<[1], [0], [0], [1], [0, 0, 1, 1], [], []>} : vector<8x8xf32>, vector<8x8xf32>, vector<8x8xf32> -> vector<8x8xf32>
    %304 = vector.extract_strided_slice %283 {offsets = [0, 8], sizes = [8, 8], strides = [1, 1]} : vector<8x32xf32> to vector<8x8xf32>
    %305 = vector.extract_strided_slice %284 {offsets = [0, 8], sizes = [8, 8], strides = [1, 1]} : vector<8x32xf32> to vector<8x8xf32>
    %306 = vector.extract_strided_slice %285 {offsets = [0, 8], sizes = [8, 8], strides = [1, 1]} : vector<8x32xf32> to vector<8x8xf32>
    %cst_100 = arith.constant dense<0.000000e+00> : vector<8x8xf32>
    %307 = tpu.matmul %304, %305, %cst_100 {dimension_numbers = #tpu.dot_dimension_numbers<[1], [1], [0], [0], [0, 0, 1, 0], [], []>} : vector<8x8xf32>, vector<8x8xf32>, vector<8x8xf32> -> vector<8x8xf32>
    %cst_101 = arith.constant 0.353553385 : f32
    %308 = vector.broadcast %cst_101 : f32 to vector<8x8xf32>
    %309 = arith.mulf %307, %308 : vector<8x8xf32>
    %310 = arith.addf %309, %206 : vector<8x8xf32>
    %cst_102 = arith.constant dense<0xFF800000> : vector<8xf32>
    %311 = vector.multi_reduction <maximumf>, %310, %cst_102 [1] : vector<8x8xf32> to vector<8xf32>
    %312 = vector.shape_cast %311 : vector<8xf32> to vector<8x1xf32>
    %313 = vector.broadcast %312 : vector<8x1xf32> to vector<8x8xf32>
    %314 = arith.subf %310, %313 : vector<8x8xf32>
    %315 = math.exp %314 : vector<8x8xf32>
    %cst_103 = arith.constant dense<0.000000e+00> : vector<8xf32>
    %316 = vector.multi_reduction <add>, %315, %cst_103 [1] : vector<8x8xf32> to vector<8xf32>
    %317 = vector.shape_cast %316 : vector<8xf32> to vector<8x1xf32>
    %318 = tpu.reciprocal %317 : vector<8x1xf32> -> vector<8x1xf32>
    %319 = vector.broadcast %318 : vector<8x1xf32> to vector<8x8xf32>
    %320 = arith.mulf %315, %319 : vector<8x8xf32>
    %cst_104 = arith.constant dense<0.000000e+00> : vector<8x8xf32>
    %321 = tpu.matmul %320, %306, %cst_104 {dimension_numbers = #tpu.dot_dimension_numbers<[1], [0], [0], [1], [0, 0, 1, 1], [], []>} : vector<8x8xf32>, vector<8x8xf32>, vector<8x8xf32> -> vector<8x8xf32>
    %322 = vector.extract_strided_slice %283 {offsets = [0, 16], sizes = [8, 8], strides = [1, 1]} : vector<8x32xf32> to vector<8x8xf32>
    %323 = vector.extract_strided_slice %284 {offsets = [0, 16], sizes = [8, 8], strides = [1, 1]} : vector<8x32xf32> to vector<8x8xf32>
    %324 = vector.extract_strided_slice %285 {offsets = [0, 16], sizes = [8, 8], strides = [1, 1]} : vector<8x32xf32> to vector<8x8xf32>
    %cst_105 = arith.constant dense<0.000000e+00> : vector<8x8xf32>
    %325 = tpu.matmul %322, %323, %cst_105 {dimension_numbers = #tpu.dot_dimension_numbers<[1], [1], [0], [0], [0, 0, 1, 0], [], []>} : vector<8x8xf32>, vector<8x8xf32>, vector<8x8xf32> -> vector<8x8xf32>
    %cst_106 = arith.constant 0.353553385 : f32
    %326 = vector.broadcast %cst_106 : f32 to vector<8x8xf32>
    %327 = arith.mulf %325, %326 : vector<8x8xf32>
    %328 = arith.addf %327, %206 : vector<8x8xf32>
    %cst_107 = arith.constant dense<0xFF800000> : vector<8xf32>
    %329 = vector.multi_reduction <maximumf>, %328, %cst_107 [1] : vector<8x8xf32> to vector<8xf32>
    %330 = vector.shape_cast %329 : vector<8xf32> to vector<8x1xf32>
    %331 = vector.broadcast %330 : vector<8x1xf32> to vector<8x8xf32>
    %332 = arith.subf %328, %331 : vector<8x8xf32>
    %333 = math.exp %332 : vector<8x8xf32>
    %cst_108 = arith.constant dense<0.000000e+00> : vector<8xf32>
    %334 = vector.multi_reduction <add>, %333, %cst_108 [1] : vector<8x8xf32> to vector<8xf32>
    %335 = vector.shape_cast %334 : vector<8xf32> to vector<8x1xf32>
    %336 = tpu.reciprocal %335 : vector<8x1xf32> -> vector<8x1xf32>
    %337 = vector.broadcast %336 : vector<8x1xf32> to vector<8x8xf32>
    %338 = arith.mulf %333, %337 : vector<8x8xf32>
    %cst_109 = arith.constant dense<0.000000e+00> : vector<8x8xf32>
    %339 = tpu.matmul %338, %324, %cst_109 {dimension_numbers = #tpu.dot_dimension_numbers<[1], [0], [0], [1], [0, 0, 1, 1], [], []>} : vector<8x8xf32>, vector<8x8xf32>, vector<8x8xf32> -> vector<8x8xf32>
    %340 = vector.extract_strided_slice %283 {offsets = [0, 24], sizes = [8, 8], strides = [1, 1]} : vector<8x32xf32> to vector<8x8xf32>
    %341 = vector.extract_strided_slice %284 {offsets = [0, 24], sizes = [8, 8], strides = [1, 1]} : vector<8x32xf32> to vector<8x8xf32>
    %342 = vector.extract_strided_slice %285 {offsets = [0, 24], sizes = [8, 8], strides = [1, 1]} : vector<8x32xf32> to vector<8x8xf32>
    %cst_110 = arith.constant dense<0.000000e+00> : vector<8x8xf32>
    %343 = tpu.matmul %340, %341, %cst_110 {dimension_numbers = #tpu.dot_dimension_numbers<[1], [1], [0], [0], [0, 0, 1, 0], [], []>} : vector<8x8xf32>, vector<8x8xf32>, vector<8x8xf32> -> vector<8x8xf32>
    %cst_111 = arith.constant 0.353553385 : f32
    %344 = vector.broadcast %cst_111 : f32 to vector<8x8xf32>
    %345 = arith.mulf %343, %344 : vector<8x8xf32>
    %346 = arith.addf %345, %206 : vector<8x8xf32>
    %cst_112 = arith.constant dense<0xFF800000> : vector<8xf32>
    %347 = vector.multi_reduction <maximumf>, %346, %cst_112 [1] : vector<8x8xf32> to vector<8xf32>
    %348 = vector.shape_cast %347 : vector<8xf32> to vector<8x1xf32>
    %349 = vector.broadcast %348 : vector<8x1xf32> to vector<8x8xf32>
    %350 = arith.subf %346, %349 : vector<8x8xf32>
    %351 = math.exp %350 : vector<8x8xf32>
    %cst_113 = arith.constant dense<0.000000e+00> : vector<8xf32>
    %352 = vector.multi_reduction <add>, %351, %cst_113 [1] : vector<8x8xf32> to vector<8xf32>
    %353 = vector.shape_cast %352 : vector<8xf32> to vector<8x1xf32>
    %354 = tpu.reciprocal %353 : vector<8x1xf32> -> vector<8x1xf32>
    %355 = vector.broadcast %354 : vector<8x1xf32> to vector<8x8xf32>
    %356 = arith.mulf %351, %355 : vector<8x8xf32>
    %cst_114 = arith.constant dense<0.000000e+00> : vector<8x8xf32>
    %357 = tpu.matmul %356, %342, %cst_114 {dimension_numbers = #tpu.dot_dimension_numbers<[1], [0], [0], [1], [0, 0, 1, 1], [], []>} : vector<8x8xf32>, vector<8x8xf32>, vector<8x8xf32> -> vector<8x8xf32>
    %358 = tpu.concatenate %303, %321, %339, %357 in 1 : vector<8x8xf32>, vector<8x8xf32>, vector<8x8xf32>, vector<8x8xf32> -> vector<8x32xf32>
    %359 = tpu.concatenate %282, %358 in 0 : vector<8x32xf32>, vector<8x32xf32> -> vector<16x32xf32>
    %c0_115 = arith.constant 0 : index
    %c0_116 = arith.constant 0 : index
    %360 = vector.load %arg14[%c0_115, %c0_116] : memref<32x32xf32, #tpu.memory_space<vmem>>, vector<32x32xf32>
    %cst_117 = arith.constant dense<0.000000e+00> : vector<16x32xf32>
    %361 = tpu.matmul %359, %360, %cst_117 {dimension_numbers = #tpu.dot_dimension_numbers<[1], [0], [0], [1], [0, 0, 1, 1], [], []>} : vector<16x32xf32>, vector<32x32xf32>, vector<16x32xf32> -> vector<16x32xf32>
    %c0_118 = arith.constant 0 : index
    %c0_119 = arith.constant 0 : index
    %362 = vector.load %arg15[%c0_118, %c0_119] : memref<1x32xf32, #tpu.memory_space<vmem>>, vector<1x32xf32>
    %363 = vector.broadcast %362 : vector<1x32xf32> to vector<16x32xf32>
    %364 = arith.addf %361, %363 : vector<16x32xf32>
    %365 = arith.addf %193, %364 : vector<16x32xf32>
    %c0_120 = arith.constant 0 : index
    %c0_121 = arith.constant 0 : index
    %366 = vector.load %arg16[%c0_120, %c0_121] : memref<1x32xf32, #tpu.memory_space<vmem>>, vector<1x32xf32>
    %c0_122 = arith.constant 0 : index
    %c0_123 = arith.constant 0 : index
    %367 = vector.load %arg17[%c0_122, %c0_123] : memref<1x32xf32, #tpu.memory_space<vmem>>, vector<1x32xf32>
    %cst_124 = arith.constant dense<0.000000e+00> : vector<16xf32>
    %368 = vector.multi_reduction <add>, %365, %cst_124 [1] : vector<16x32xf32> to vector<16xf32>
    %369 = vector.shape_cast %368 : vector<16xf32> to vector<16x1xf32>
    %cst_125 = arith.constant 3.200000e+01 : f32
    %370 = vector.broadcast %cst_125 : f32 to vector<16x1xf32>
    %371 = arith.divf %369, %370 : vector<16x1xf32>
    %372 = vector.broadcast %371 : vector<16x1xf32> to vector<16x32xf32>
    %373 = arith.subf %365, %372 : vector<16x32xf32>
    %374 = arith.mulf %373, %373 : vector<16x32xf32>
    %cst_126 = arith.constant dense<0.000000e+00> : vector<16xf32>
    %375 = vector.multi_reduction <add>, %374, %cst_126 [1] : vector<16x32xf32> to vector<16xf32>
    %376 = vector.shape_cast %375 : vector<16xf32> to vector<16x1xf32>
    %cst_127 = arith.constant 3.200000e+01 : f32
    %377 = vector.broadcast %cst_127 : f32 to vector<16x1xf32>
    %378 = arith.divf %376, %377 : vector<16x1xf32>
    %379 = vector.broadcast %371 : vector<16x1xf32> to vector<16x32xf32>
    %380 = arith.subf %365, %379 : vector<16x32xf32>
    %cst_128 = arith.constant 9.99999997E-7 : f32
    %381 = vector.broadcast %cst_128 : f32 to vector<16x1xf32>
    %382 = arith.addf %378, %381 : vector<16x1xf32>
    %383 = math.sqrt %382 : vector<16x1xf32>
    %384 = vector.broadcast %383 : vector<16x1xf32> to vector<16x32xf32>
    %385 = arith.divf %380, %384 : vector<16x32xf32>
    %386 = vector.broadcast %366 : vector<1x32xf32> to vector<16x32xf32>
    %387 = arith.mulf %385, %386 : vector<16x32xf32>
    %388 = vector.broadcast %367 : vector<1x32xf32> to vector<16x32xf32>
    %389 = arith.addf %387, %388 : vector<16x32xf32>
    %c0_129 = arith.constant 0 : index
    %c0_130 = arith.constant 0 : index
    %390 = vector.load %arg18[%c0_129, %c0_130] : memref<32x64xf32, #tpu.memory_space<vmem>>, vector<32x64xf32>
    %cst_131 = arith.constant dense<0.000000e+00> : vector<16x64xf32>
    %391 = tpu.matmul %389, %390, %cst_131 {dimension_numbers = #tpu.dot_dimension_numbers<[1], [0], [0], [1], [0, 0, 1, 1], [], []>} : vector<16x32xf32>, vector<32x64xf32>, vector<16x64xf32> -> vector<16x64xf32>
    %c0_132 = arith.constant 0 : index
    %c0_133 = arith.constant 0 : index
    %392 = vector.load %arg19[%c0_132, %c0_133] : memref<1x64xf32, #tpu.memory_space<vmem>>, vector<1x64xf32>
    %393 = vector.broadcast %392 : vector<1x64xf32> to vector<16x64xf32>
    %394 = arith.addf %391, %393 : vector<16x64xf32>
    %cst_134 = arith.constant 0.000000e+00 : f32
    %395 = vector.broadcast %cst_134 : f32 to vector<16x64xf32>
    %396 = arith.maximumf %394, %395 : vector<16x64xf32>
    %c0_135 = arith.constant 0 : index
    %c0_136 = arith.constant 0 : index
    %397 = vector.load %arg20[%c0_135, %c0_136] : memref<64x32xf32, #tpu.memory_space<vmem>>, vector<64x32xf32>
    %cst_137 = arith.constant dense<0.000000e+00> : vector<16x32xf32>
    %398 = tpu.matmul %396, %397, %cst_137 {dimension_numbers = #tpu.dot_dimension_numbers<[1], [0], [0], [1], [0, 0, 1, 1], [], []>} : vector<16x64xf32>, vector<64x32xf32>, vector<16x32xf32> -> vector<16x32xf32>
    %c0_138 = arith.constant 0 : index
    %c0_139 = arith.constant 0 : index
    %399 = vector.load %arg21[%c0_138, %c0_139] : memref<1x32xf32, #tpu.memory_space<vmem>>, vector<1x32xf32>
    %400 = vector.broadcast %399 : vector<1x32xf32> to vector<16x32xf32>
    %401 = arith.addf %398, %400 : vector<16x32xf32>
    %402 = arith.addf %389, %401 : vector<16x32xf32>
    %c0_140 = arith.constant 0 : index
    %c0_141 = arith.constant 0 : index
    %403 = vector.load %arg22[%c0_140, %c0_141] : memref<1x32xf32, #tpu.memory_space<vmem>>, vector<1x32xf32>
    %c0_142 = arith.constant 0 : index
    %c0_143 = arith.constant 0 : index
    %404 = vector.load %arg23[%c0_142, %c0_143] : memref<1x32xf32, #tpu.memory_space<vmem>>, vector<1x32xf32>
    %cst_144 = arith.constant dense<0.000000e+00> : vector<16xf32>
    %405 = vector.multi_reduction <add>, %402, %cst_144 [1] : vector<16x32xf32> to vector<16xf32>
    %406 = vector.shape_cast %405 : vector<16xf32> to vector<16x1xf32>
    %cst_145 = arith.constant 3.200000e+01 : f32
    %407 = vector.broadcast %cst_145 : f32 to vector<16x1xf32>
    %408 = arith.divf %406, %407 : vector<16x1xf32>
    %409 = vector.broadcast %408 : vector<16x1xf32> to vector<16x32xf32>
    %410 = arith.subf %402, %409 : vector<16x32xf32>
    %411 = arith.mulf %410, %410 : vector<16x32xf32>
    %cst_146 = arith.constant dense<0.000000e+00> : vector<16xf32>
    %412 = vector.multi_reduction <add>, %411, %cst_146 [1] : vector<16x32xf32> to vector<16xf32>
    %413 = vector.shape_cast %412 : vector<16xf32> to vector<16x1xf32>
    %cst_147 = arith.constant 3.200000e+01 : f32
    %414 = vector.broadcast %cst_147 : f32 to vector<16x1xf32>
    %415 = arith.divf %413, %414 : vector<16x1xf32>
    %416 = vector.broadcast %408 : vector<16x1xf32> to vector<16x32xf32>
    %417 = arith.subf %402, %416 : vector<16x32xf32>
    %cst_148 = arith.constant 9.99999997E-7 : f32
    %418 = vector.broadcast %cst_148 : f32 to vector<16x1xf32>
    %419 = arith.addf %415, %418 : vector<16x1xf32>
    %420 = math.sqrt %419 : vector<16x1xf32>
    %421 = vector.broadcast %420 : vector<16x1xf32> to vector<16x32xf32>
    %422 = arith.divf %417, %421 : vector<16x32xf32>
    %423 = vector.broadcast %403 : vector<1x32xf32> to vector<16x32xf32>
    %424 = arith.mulf %422, %423 : vector<16x32xf32>
    %425 = vector.broadcast %404 : vector<1x32xf32> to vector<16x32xf32>
    %426 = arith.addf %424, %425 : vector<16x32xf32>
    %c0_149 = arith.constant 0 : index
    %c0_150 = arith.constant 0 : index
    %427 = vector.load %arg24[%c0_149, %c0_150] : memref<16x32xf32, #tpu.memory_space<vmem>>, vector<16x32xf32>
    tpu.vector_store %arg24[%c0_149, %c0_150], %426 {strides = array<i32>} : memref<16x32xf32, #tpu.memory_space<vmem>>, vector<16x32xf32>,
    return
  }
}

</mosaic_0001>

<bundles_post_ra>
// kernel: tpu_custom_call.1
= control target key start
LH: loop header
LB: loop body
LE: loop exit
PB: predicated region body
PF: predicated region fallthrough
CT: control target
= control target key end

     0   :  { %s5356_s0 = inlined_call_operand.hbm [shape: f32[16,32], index: 0, kind: input, shape index: {}]   ;;  %s5357_s1 = inlined_call_operand.hbm [shape: f32[16,32], index: 1, kind: input, shape index: {}]   ;;  %s5358_s2 = inlined_call_operand.hbm [shape: f32[8,8], index: 2, kind: input, shape index: {}]   ;;  %s5359_s3 = inlined_call_operand.hbm [shape: f32[8,8], index: 3, kind: input, shape index: {}]   ;;  %s5360_s4 = inlined_call_operand.vmem [shape: f32[32,96], index: 4, kind: input, shape index: {}]   ;;  %s5361_s5 = inlined_call_operand.vmem [shape: f32[1,96], index: 5, kind: input, shape index: {}]   ;;  %s5362_s6 = inlined_call_operand.vmem [shape: f32[32,32], index: 6, kind: input, shape index: {}]   ;;  %s5363_s7 = inlined_call_operand.vmem [shape: f32[1,32], index: 7, kind: input, shape index: {}]   ;;  %s5364_s8 = inlined_call_operand.vmem [shape: f32[1,32], index: 8, kind: input, shape index: {}]   ;;  %s5365_s9 = inlined_call_operand.vmem [shape: f32[1,32], index: 9, kind: input, shape index: {}]   ;;  %s5366_s10 = inlined_call_operand.vmem [shape: f32[32,64], index: 10, kind: input, shape index: {}]   ;;  %s5367_s11 = inlined_call_operand.hbm [shape: f32[1,64], index: 11, kind: input, shape index: {}]   ;;  %s5368_s12 = inlined_call_operand.hbm [shape: f32[32,32], index: 12, kind: input, shape index: {}]   ;;  %s5369_s13 = inlined_call_operand.hbm [shape: f32[1,32], index: 13, kind: input, shape index: {}]   ;;  %s5370_s14 = inlined_call_operand.hbm [shape: f32[32,32], index: 14, kind: input, shape index: {}]   ;;  %s5371_s15 = inlined_call_operand.hbm [shape: f32[1,32], index: 15, kind: input, shape index: {}]   ;;  %s5372_s16 = inlined_call_operand.hbm [shape: f32[1,32], index: 16, kind: input, shape index: {}]   ;;  %s5373_s17 = inlined_call_operand.hbm [shape: f32[1,32], index: 17, kind: input, shape index: {}]   ;;  %s5374_s18 = inlined_call_operand.hbm [shape: f32[32,64], index: 18, kind: input, shape index: {}]   ;;  %s5375_s19 = inlined_call_operand.hbm [shape: f32[1,64], index: 19, kind: input, shape index: {}]   ;;  %s5376_s20 = inlined_call_operand.vmem [shape: f32[64,32], index: 20, kind: input, shape index: {}]   ;;  %s5377_s21 = inlined_call_operand.vmem [shape: f32[1,32], index: 21, kind: input, shape index: {}]   ;;  %s5378_s22 = inlined_call_operand.vmem [shape: f32[1,32], index: 22, kind: input, shape index: {}]   ;;  %s5379_s23 = inlined_call_operand.vmem [shape: f32[1,32], index: 23, kind: input, shape index: {}]   ;;  %s5380_s24 = inlined_call_operand.hbm [shape: f32[16,32], index: 24, kind: output, shape index: {}]  }
   0x1   :  { %5383 = sst [smem:[#allocation32_spill]] %s5356_s0 }
   0x2   :  { %5384 = sst [smem:[#allocation33_spill]] %s5357_s1 }
   0x3   :  { %5385 = sst [smem:[#allocation34_spill]] %s5358_s2 }
   0x4   :  { %5386 = sst [smem:[#allocation35_spill]] %s5359_s3 }
   0x5   :  { %5387 = sst [smem:[#allocation36_spill]] %s5360_s4 }
   0x6   :  { %5388 = sst [smem:[#allocation37_spill]] %s5361_s5 }
   0x7   :  { %5389 = sst [smem:[#allocation38_spill]] %s5362_s6 }
   0x8   :  { %5390 = sst [smem:[#allocation39_spill]] %s5363_s7 }
   0x9   :  { %5391 = sst [smem:[#allocation40_spill]] %s5364_s8 }
   0xa   :  { %5392 = sst [smem:[#allocation41_spill]] %s5380_s24 }
   0xb   :  { %29 = vsyncpa [#allocation3], 0 }
   0xc   :  { %30 = vsyncpa [#allocation6], 0 }
   0xd   :  { %31 = vsyncpa [#allocation9], 0 }
   0xe   :  { %32 = vsyncpa [#allocation12], 0 }
   0xf   :  { %33 = vsyncpa [#allocation15], 0 }
  0x10   :  { %34 = vsyncpa [#allocation18], 0 }
  0x11   :  { %35 = vsyncpa [#allocation21], 0 }
  0x12   :  { %36 = vsyncpa [#allocation4], 0  ;;  %s4674_s5 = smov [#allocation5]   ;;  %s4675_s27 = smov [#allocation8]  }
  0x13   :  { %s54_s26 = sshll.u32 %s4674_s5, 4  ;;  %s77_s28 = sshll.u32 %s4675_s27, 4  ;;  %s55_s26 = int_to_ptr.vmem [resolvable:$true] %s54_s26  ;;  %s78_s28 = int_to_ptr.vmem [resolvable:$true] %s77_s28 }
  0x14   :  { %s4386_s6 = scalar_lea.vmem %s55_s26, 256  ;;  %p4391_p1 = scmp.lt.s32.totalorder %s55_s26, %s55_s26 }
  0x15   :  { %p4387_p0 = scmp.ne.s32.totalorder %s55_s26, %s4386_s6  ;;  %p4392_p2 = scmp.lt.s32.totalorder %s4386_s6, %s4386_s6 }
  0x17   :  { %p4393_p3 = por %p4392_p2, %p4391_p1 }
  0x19   :  { %p4394_p4 = pnand %p4393_p3, %p4387_p0 }
  0x1b   :  { %4397 = shalt.err (!%p4394_p4)
}
  0x1c   :  { %s4676_s2 = smov 128   ;;  %s4677_s29 = smov 8  }
  0x1d   :  { %s5393_s30 = sld [smem:[#allocation33_spill]]  ;;  %s4406_s3 = scalar_lea.vmem %s78_s28, 128 }
  0x1e   :  { %p4407_p5 = scmp.ne.s32.totalorder %s78_s28, %s4406_s3  ;;  %p4411_p6 = scmp.lt.s32.totalorder %s78_s28, %s78_s28 }
  0x1f   :  { %p4412_p7 = scmp.lt.s32.totalorder %s4406_s3, %s4406_s3 }
  0x21   :  { %p4413_p8 = por %p4412_p7, %p4411_p6 }
  0x23   :  { %60 = dma.hbm_to_vmem [thread:$0]  %s5393_s30, 256, %s55_s26, [#allocation6], %s4676_s2, %s4676_s2, %s4677_s29  }
  0x24   :  { %p4414_p9 = pnand %p4413_p8, %p4407_p5 }
  0x26   :  { %4417 = shalt.err (!%p4414_p9)
}
  0x27   :  { %s5394_s4 = sld [smem:[#allocation35_spill]]  ;;  %s4678_s1 = smov [#allocation11]  }
  0x28   :  { %s110_s5 = sshll.u32 %s4678_s1, 4  ;;  %s4679_s27 = smov [#allocation14]   ;;  %s111_s5 = int_to_ptr.vmem [resolvable:$true] %s110_s5 }
  0x29   :  { %s132_s6 = sshll.u32 %s4679_s27, 4  ;;  %s4426_s24 = scalar_lea.vmem %s111_s5, 512  ;;  %s133_s6 = int_to_ptr.vmem [resolvable:$true] %s132_s6 }
  0x2a   :  { %p4427_p10 = scmp.ne.s32.totalorder %s111_s5, %s4426_s24  ;;  %p4431_p11 = scmp.lt.s32.totalorder %s111_s5, %s111_s5 }
  0x2b   :  { %p4432_p12 = scmp.lt.s32.totalorder %s4426_s24, %s4426_s24 }
  0x2d   :  { %80 = dma.hbm_to_vmem [thread:$0]  %s5394_s4, 128, %s78_s28, [#allocation9]  }
  0x2e   :  { %p4433_p13 = por %p4432_p12, %p4431_p11 }
  0x30   :  { %p4434_p0 = pnand %p4433_p13, %p4427_p10 }
  0x32   :  { %4437 = shalt.err (!%p4434_p0)
}
  0x33   :  { %116 = dma.hbm_to_vmem [thread:$0]  %s5368_s12, 512, %s111_s5, [#allocation12], %s4676_s2, %s4676_s2, %s4677_s29  }
  0x34   :  { %s4446_s28 = scalar_lea.vmem %s133_s6, 512  ;;  %p4451_p2 = scmp.lt.s32.totalorder %s133_s6, %s133_s6 }
  0x35   :  { %p4447_p1 = scmp.ne.s32.totalorder %s133_s6, %s4446_s28  ;;  %p4452_p3 = scmp.lt.s32.totalorder %s4446_s28, %s4446_s28 }
  0x37   :  { %p4453_p4 = por %p4452_p3, %p4451_p2 }
  0x39   :  { %p4454_p5 = pnand %p4453_p4, %p4447_p1 }
  0x3b   :  { %4457 = shalt.err (!%p4454_p5)
}
  0x3c   :  { %138 = dma.hbm_to_vmem [thread:$0]  %s5370_s14, 512, %s133_s6, [#allocation15], %s4676_s2, %s4676_s2, %s4677_s29  }
  0x3d   :  { %s4680_s30 = smov [#allocation17]   ;;  %s4681_s25 = smov [#allocation20]  }
  0x3e   :  { %s155_s3 = sshll.u32 %s4680_s30, 4  ;;  %s174_s8 = sshll.u32 %s4681_s25, 4  ;;  %s156_s3 = int_to_ptr.vmem [resolvable:$true] %s155_s3  ;;  %s175_s8 = int_to_ptr.vmem [resolvable:$true] %s174_s8 }
  0x3f   :  { %s4466_s12 = scalar_lea.vmem %s156_s3, 16  ;;  %s4470_s4 = scalar_lea.vmem %s156_s3, 32 }
  0x40   :  { %p4467_p6 = scmp.ne.s32.totalorder %s156_s3, %s4466_s12  ;;  %p4471_p7 = scmp.lt.s32.totalorder %s156_s3, %s156_s3 }
  0x41   :  { %p4472_p8 = scmp.lt.s32.totalorder %s4470_s4, %s4466_s12 }
  0x43   :  { %p4473_p9 = por %p4472_p8, %p4471_p7 }
  0x45   :  { %p4474_p10 = pnand %p4473_p9, %p4467_p6 }
  0x47   :  { %4477 = shalt.err (!%p4474_p10)
}
  0x48   :  { %158 = dma.hbm_to_vmem [thread:$0]  %s5372_s16, 16, %s156_s3, [#allocation18]  }
  0x49   :  { %s4486_s27 = scalar_lea.vmem %s175_s8, 512  ;;  %p4491_p12 = scmp.lt.s32.totalorder %s175_s8, %s175_s8 }
  0x4a   :  { %p4487_p11 = scmp.ne.s32.totalorder %s175_s8, %s4486_s27  ;;  %p4492_p13 = scmp.lt.s32.totalorder %s4486_s27, %s4486_s27 }
  0x4c   :  { %p4493_p0 = por %p4492_p13, %p4491_p12 }
  0x4e   :  { %p4494_p1 = pnand %p4493_p0, %p4487_p11 }
  0x50   :  { %4497 = shalt.err (!%p4494_p1)
}
  0x51   :  { %180 = dma.hbm_to_vmem [thread:$0]  %s5374_s18, 512, %s175_s8, [#allocation21], %s4676_s2, %s4676_s2, %s4677_s29  }
  0x52   :  { %s4682_s26 = smov [#allocation2]   ;;  %s4683_s28 = smov [#allocation7]  }
  0x53   :  { %s42_s0 = sshll.u32 %s4682_s26, 4  ;;  %s67_s24 = sshll.u32 %s4683_s28, 4  ;;  %s43_s0 = int_to_ptr.vmem [resolvable:$true] %s42_s0  ;;  %s68_s24 = int_to_ptr.vmem [resolvable:$true] %s67_s24 }
  0x54   :  { %s4506_s16 = scalar_lea.vmem %s43_s0, 256  ;;  %p4511_p3 = scmp.lt.s32.totalorder %s43_s0, %s43_s0 }
  0x55   :  { %p4507_p2 = scmp.ne.s32.totalorder %s43_s0, %s4506_s16  ;;  %p4512_p4 = scmp.lt.s32.totalorder %s4506_s16, %s4506_s16 }
  0x57   :  { %p4513_p5 = por %p4512_p4, %p4511_p3 }
  0x59   :  { %p4514_p6 = pnand %p4513_p5, %p4507_p2 }
  0x5b   :  { %4517 = shalt.err (!%p4514_p6)
}
  0x5c   :  { %s5395_s3 = sld [smem:[#allocation32_spill]]  ;;  %s4526_s18 = scalar_lea.vmem %s68_s24, 128 }
  0x5d   :  { %p4527_p7 = scmp.ne.s32.totalorder %s68_s24, %s4526_s18  ;;  %p4531_p8 = scmp.lt.s32.totalorder %s68_s24, %s68_s24 }
  0x5e   :  { %p4532_p9 = scmp.lt.s32.totalorder %s4526_s18, %s4526_s18 }
  0x60   :  { %p4533_p10 = por %p4532_p9, %p4531_p8 }
  0x62   :  { %48 = dma.hbm_to_vmem [thread:$0]  %s5395_s3, 256, %s43_s0, [#allocation3], %s4676_s2, %s4676_s2, %s4677_s29  }
  0x63   :  { %p4534_p11 = pnand %p4533_p10, %p4527_p7 }
  0x65   :  { %4537 = shalt.err (!%p4534_p11)
}
  0x66   :  { %s5396_s12 = sld [smem:[#allocation34_spill]]  ;;  %s4684_s4 = smov [#allocation10]  }
  0x67   :  { %s101_s1 = sshll.u32 %s4684_s4, 4  ;;  %s4685_s5 = smov [#allocation13]   ;;  %s102_s1 = int_to_ptr.vmem [resolvable:$true] %s101_s1 }
  0x68   :  { %s123_s27 = sshll.u32 %s4685_s5, 4  ;;  %s4546_s14 = scalar_lea.vmem %s102_s1, 16  ;;  %s124_s27 = int_to_ptr.vmem [resolvable:$true] %s123_s27 }
  0x69   :  { %p4547_p12 = scmp.ne.s32.totalorder %s102_s1, %s4546_s14  ;;  %s4550_s6 = scalar_lea.vmem %s102_s1, 32 }
  0x6a   :  { %p4551_p13 = scmp.lt.s32.totalorder %s102_s1, %s102_s1  ;;  %p4552_p0 = scmp.lt.s32.totalorder %s4550_s6, %s4546_s14 }
  0x6c   :  { %70 = dma.hbm_to_vmem [thread:$0]  %s5396_s12, 128, %s68_s24, [#allocation6]  }
  0x6d   :  { %p4553_p1 = por %p4552_p0, %p4551_p13 }
  0x6f   :  { %p4554_p2 = pnand %p4553_p1, %p4547_p12 }
  0x71   :  { %4557 = shalt.err (!%p4554_p2)
}
  0x72   :  { %104 = dma.hbm_to_vmem [thread:$0]  %s5367_s11, 16, %s102_s1, [#allocation9]  }
  0x73   :  { %s4566_s28 = scalar_lea.vmem %s124_s27, 16  ;;  %s4570_s24 = scalar_lea.vmem %s124_s27, 32 }
  0x74   :  { %p4567_p3 = scmp.ne.s32.totalorder %s124_s27, %s4566_s28  ;;  %p4571_p4 = scmp.lt.s32.totalorder %s124_s27, %s124_s27 }
  0x75   :  { %p4572_p5 = scmp.lt.s32.totalorder %s4570_s24, %s4566_s28 }
  0x77   :  { %p4573_p6 = por %p4572_p5, %p4571_p4 }
  0x79   :  { %p4574_p7 = pnand %p4573_p6, %p4567_p3 }
  0x7b   :  { %4577 = shalt.err (!%p4574_p7)
}
  0x7c   :  { %126 = dma.hbm_to_vmem [thread:$0]  %s5369_s13, 16, %s124_s27, [#allocation12]  }
  0x7d   :  { %s4686_s30 = smov [#allocation16]   ;;  %s4687_s18 = smov [#allocation19]  }
  0x7e   :  { %s145_s3 = sshll.u32 %s4686_s30, 4  ;;  %s165_s25 = sshll.u32 %s4687_s18, 4  ;;  %s146_s3 = int_to_ptr.vmem [resolvable:$true] %s145_s3  ;;  %s166_s25 = int_to_ptr.vmem [resolvable:$true] %s165_s25 }
  0x7f   :  { %s4586_s8 = scalar_lea.vmem %s146_s3, 16  ;;  %s4590_s11 = scalar_lea.vmem %s146_s3, 32 }
  0x80   :  { %p4587_p8 = scmp.ne.s32.totalorder %s146_s3, %s4586_s8  ;;  %p4591_p9 = scmp.lt.s32.totalorder %s146_s3, %s146_s3 }
  0x81   :  { %p4592_p10 = scmp.lt.s32.totalorder %s4590_s11, %s4586_s8 }
  0x83   :  { %p4593_p11 = por %p4592_p10, %p4591_p9 }
  0x85   :  { %p4594_p12 = pnand %p4593_p11, %p4587_p8 }
  0x87   :  { %4597 = shalt.err (!%p4594_p12)
}
  0x88   :  { %148 = dma.hbm_to_vmem [thread:$0]  %s5371_s15, 16, %s146_s3, [#allocation15]  }
  0x89   :  { %s4606_s1 = scalar_lea.vmem %s166_s25, 16  ;;  %s4610_s13 = scalar_lea.vmem %s166_s25, 32 }
  0x8a   :  { %p4607_p13 = scmp.ne.s32.totalorder %s166_s25, %s4606_s1  ;;  %p4611_p0 = scmp.lt.s32.totalorder %s166_s25, %s166_s25 }
  0x8b   :  { %p4612_p1 = scmp.lt.s32.totalorder %s4610_s13, %s4606_s1 }
  0x8d   :  { %p4613_p2 = por %p4612_p1, %p4611_p0 }
  0x8f   :  { %p4614_p3 = pnand %p4613_p2, %p4607_p13 }
  0x91   :  { %4617 = shalt.err (!%p4614_p3)
}
  0x92   :  { %168 = dma.hbm_to_vmem [thread:$0]  %s5373_s17, 16, %s166_s25, [#allocation18]  }
  0x93   :  { %s4688_s14 = smov [#allocation22]  }
  0x94   :  { %s187_s6 = sshll.u32 %s4688_s14, 4  ;;  %s188_s6 = int_to_ptr.vmem [resolvable:$true] %s187_s6 }
  0x95   :  { %s4626_s26 = scalar_lea.vmem %s188_s6, 16  ;;  %s4630_s0 = scalar_lea.vmem %s188_s6, 32 }
  0x96   :  { %p4627_p4 = scmp.ne.s32.totalorder %s188_s6, %s4626_s26  ;;  %p4631_p5 = scmp.lt.s32.totalorder %s188_s6, %s188_s6 }
  0x97   :  { %p4632_p6 = scmp.lt.s32.totalorder %s4630_s0, %s4626_s26 }
  0x99   :  { %p4633_p7 = por %p4632_p6, %p4631_p5 }
  0x9b   :  { %p4634_p8 = pnand %p4633_p7, %p4627_p4 }
  0x9d   :  { %4637 = shalt.err (!%p4634_p8)
}
  0x9e   :  { %190 = dma.hbm_to_vmem [thread:$0]  %s5375_s19, 16, %s188_s6, [#allocation21]  }
  0x9f   :  { %4658 = dma.done.wait [#allocation3], 256  }
  0xa0   :  { %4659 = vsyncadd [#allocation3], 4294967040 }
  0xa1   :  { %4660 = dma.done.wait [#allocation6], 384  }
  0xa2   :  { %4661 = vsyncadd [#allocation6], 4294966912 }
  0xa3   :  { %4662 = dma.done.wait [#allocation9], 144  }
  0xa4   :  { %4663 = vsyncadd [#allocation9], 4294967152 }
  0xa5   :  { %4664 = dma.done.wait [#allocation12], 528  }
  0xa6   :  { %4665 = vsyncadd [#allocation12], 4294966768 }
  0xa7   :  { %4666 = dma.done.wait [#allocation15], 528  }
  0xa8   :  { %4667 = vsyncadd [#allocation15], 4294966768 }
  0xa9   :  { %4668 = dma.done.wait [#allocation18], 32  }
  0xaa   :  { %4669 = vsyncadd [#allocation18], 4294967264 }
  0xab   :  { %4670 = dma.done.wait [#allocation21], 528  }
  0xac   :  { %4671 = vsyncadd [#allocation21], 4294966768  ;;  %vm253_vm0 = vcmask 261120   ;;  %s5397_s16 = sld [smem:[#allocation36_spill]]  ;;  %v4890_v2 = vld [vmem:[#allocation2] sm:$0xff]  ;;  %v4900_v5 = vld [vmem:[#allocation2 + $0x8] sm:$0xff] }
  0xad   :  { %4022 = vmatprep.mubr.msk.f32.mxu1 %vm253_vm0, %v4890_v2  ;;  %v4689_v6 = vmov 0.0   ;;  %vm4690_vm1 = vmmov 0   ;;  %s5398_s12 = sld [smem:[#allocation37_spill]]  ;;  %s4691_s4 = smov 120   ;;  %vm339_vm2 = vcmask 64512   ;;  %v335_v28 = vld [vmem:[#allocation7] sm:$0xff] }
  0xae   :  { %4035 = vmatprep.subr.mxu0 %v4689_v6  ;;  %4037 = vmatprep.mubr.msk.f32.mxu0 %vm4690_vm1, %v4689_v6  ;;  %s4692_s1 = smov 96   ;;  %s4693_s13 = smov 80   ;;  %vm1017_vm3 = vcmask 130048   ;;  %vm1019_vm4 = vcmask 195584   ;;  %vm3662_vm13 = vcmask 523264  }
  0xaf   :  { %s4694_s5 = smov 88   ;;  %s4695_s27 = smov 72  }
  0xb0   :  { %s4696_s14 = smov 112   ;;  %s4697_s6 = smov 104  }
  0xb1   :  { %s4698_s26 = smov 56   ;;  %s4699_s0 = smov 64  }
  0xb2   :  { %v245_v0 = vld [vmem:[%s5397_s16 + $0x18] sm:$0xff]  ;;  %v244_v1 = vld [vmem:[%s5397_s16 + $0x10] sm:$0xff]  ;;  %v243_v3 = vld [vmem:[%s5397_s16 + $0x8] sm:$0xff]  ;;  %s4700_s15 = smov 40   ;;  %s4701_s28 = smov 48  }
  0xb3   :  { %4014 = vmatprep.subr.mxu1 %v245_v0  ;;  %v242_v4 = vld [vmem:[%s5397_s16] sm:$0xff]  ;;  %s4702_s17 = smov 16   ;;  %s4703_s24 = smov 24  }
  0xb4   :  { %4015 = vmatpush3.msra.mxu1 %v245_v0  ;;  %v3829_v8 = vld [vmem:[%s5398_s12] ss:$0 sm:$0xff]  ;;  %s5399_s7 = sld [smem:[#allocation38_spill]] }
  0xb5   :  { %4016 = vmatprep.subr.mxu1 %v244_v1  ;;  %s5400_s3 = sld [smem:[#allocation39_spill]] }
  0xb6   :  { %4017 = vmatpush3.msra.mxu1 %v244_v1 }
  0xb7   :  { %4018 = vmatprep.subr.mxu1 %v243_v3 }
  0xb8   :  { %4019 = vmatpush3.msra.mxu1 %v243_v3 }
  0xb9   :  { %4020 = vmatprep.subr.mxu1 %v242_v4 }
  0xba   :  { %4021 = vmatpush3.msra.mxu1 %v242_v4 }
  0xbb   :  { %4023 = vmatmul.mubr.msk.f32.vlgmr.msra.gmra.mxu1 %vm253_vm0, %v4900_v5  ;;  %4025 = vmatprep.subr.mxu1 %v4689_v6 }
  0xbc   :  { %4027 = vmatprep.mubr.msk.f32.mxu1 %vm4690_vm1, %v4689_v6 }
 0x17b   :  { %v4024_v7 = vpop.f32.mrf.mxu1 }
 0x17c   :  { %v4927_v11 = vadd.f32 %v4024_v7, %v3829_v8 }
 0x17d   :  { %v326_v9 = vpop.f32.mrf.mxu1 }
 0x17e   :  { %v4913_v10 = vadd.f32 %v3829_v8, %v326_v9 }
 0x180   :  { %503 = vrot.lane.b32.xlu1 %v4913_v10, %s4691_s4  ;;  %337 = vrot.lane.b32.xlu0 %v4913_v10, %s4692_s1 }
 0x184   :  { %672 = vrot.lane.b32.xlu1 %v4913_v10, %s4693_s13  ;;  %505 = vrot.lane.b32.xlu0 %v4913_v10, %s4694_s5 }
 0x188   :  { %839 = vrot.lane.b32.xlu1 %v4913_v10, %s4695_s27  ;;  %670 = vrot.lane.b32.xlu0 %v4913_v10, %s4696_s14 }
 0x18c   :  { %1022 = vrot.lane.b32.xlu1 %v4927_v11, %s4692_s1  ;;  %837 = vrot.lane.b32.xlu0 %v4913_v10, %s4697_s6 }
 0x190   :  { %1187 = vrot.lane.b32.xlu1 %v4927_v11, %s4691_s4  ;;  %1189 = vrot.lane.b32.xlu0 %v4927_v11, %s4694_s5 }
 0x194   :  { %1354 = vrot.lane.b32.xlu1 %v4927_v11, %s4696_s14  ;;  %1356 = vrot.lane.b32.xlu0 %v4927_v11, %s4693_s13 }
 0x198   :  { %1521 = vrot.lane.b32.xlu1 %v4927_v11, %s4697_s6  ;;  %1523 = vrot.lane.b32.xlu0 %v4927_v11, %s4695_s27 }
 0x19c   :  { %594 = vrot.lane.b32.xlu1 %v4913_v10, %s4698_s26  ;;  %427 = vrot.lane.b32.xlu0 %v4913_v10, %s4699_s0 }
 0x1f2   :  { %v504_v12 = vpop.permute.xlu1 %503  ;;  %v338_v13 = vpop.permute.xlu0 %337 }
 0x1f3   :  { %4026 = vmatpush3.xpose.msk.msra.mxu1 %vm339_vm2, %v338_v13 }
 0x1f4   :  { %4030 = vmatprep.subr.mxu1 %v4689_v6 }
 0x1f6   :  { %v673_v14 = vpop.permute.xlu1 %672  ;;  %4028 = vmatmul.mubr.msk.f32.vlgmr.msra.gmra.mxu1 %vm339_vm2, %v4913_v10  ;;  %v506_v15 = vpop.permute.xlu0 %505 }
 0x1f7   :  { %4036 = vmatpush3.xpose.msk.msra.mxu0 %vm339_vm2, %v506_v15  ;;  %4032 = vmatprep.mubr.msk.f32.mxu1 %vm4690_vm1, %v4689_v6 }
 0x1f8   :  { %4045 = vmatprep.subr.mxu0 %v4689_v6 }
 0x1fa   :  { %v840_v16 = vpop.permute.xlu1 %839  ;;  %4038 = vmatmul.mubr.msk.f32.vlgmr.msra.gmra.mxu0 %vm339_vm2, %v504_v12  ;;  %v671_v17 = vpop.permute.xlu0 %670 }
 0x1fb   :  { %4046 = vmatpush3.xpose.msk.msra.mxu0 %vm339_vm2, %v673_v14  ;;  %4047 = vmatprep.mubr.msk.f32.mxu0 %vm4690_vm1, %v4689_v6 }
 0x1fc   :  { %4055 = vmatprep.subr.mxu0 %v4689_v6 }
 0x1fe   :  { %4048 = vmatmul.mubr.msk.f32.vlgmr.msra.gmra.mxu0 %vm339_vm2, %v671_v17  ;;  %v838_v18 = vpop.permute.xlu0 %837  ;;  %v1023_v19 = vpop.permute.xlu1 %1022 }
 0x1ff   :  { %4056 = vmatpush3.xpose.msk.msra.mxu0 %vm339_vm2, %v840_v16  ;;  %4057 = vmatprep.mubr.msk.f32.mxu0 %vm4690_vm1, %v4689_v6 }
 0x200   :  { %4065 = vmatprep.subr.mxu0 %v4689_v6 }
 0x202   :  { %4058 = vmatmul.mubr.msk.f32.vlgmr.msra.gmra.mxu0 %vm339_vm2, %v838_v18  ;;  %v1190_v20 = vpop.permute.xlu0 %1189  ;;  %v1188_v21 = vpop.permute.xlu1 %1187 }
 0x203   :  { %4066 = vmatpush3.xpose.msk.msra.mxu0 %vm339_vm2, %v1023_v19  ;;  %4067 = vmatprep.mubr.msk.f32.mxu0 %vm4690_vm1, %v4689_v6 }
 0x204   :  { %4075 = vmatprep.subr.mxu0 %v4689_v6 }
 0x206   :  { %4068 = vmatmul.mubr.msk.f32.vlgmr.msra.gmra.mxu0 %vm339_vm2, %v4927_v11  ;;  %v1357_v22 = vpop.permute.xlu0 %1356  ;;  %v1355_v24 = vpop.permute.xlu1 %1354 }
 0x207   :  { %4076 = vmatpush3.xpose.msk.msra.mxu0 %vm339_vm2, %v1190_v20  ;;  %4077 = vmatprep.mubr.msk.f32.mxu0 %vm4690_vm1, %v4689_v6 }
 0x208   :  { %4085 = vmatprep.subr.mxu0 %v4689_v6 }
 0x20a   :  { %4078 = vmatmul.mubr.msk.f32.vlgmr.msra.gmra.mxu0 %vm339_vm2, %v1188_v21  ;;  %v1524_v23 = vpop.permute.xlu0 %1523  ;;  %v1522_v26 = vpop.permute.xlu1 %1521 }
 0x20b   :  { %4086 = vmatpush3.xpose.msk.msra.mxu0 %vm339_vm2, %v1357_v22  ;;  %4087 = vmatprep.mubr.msk.f32.mxu0 %vm4690_vm1, %v4689_v6 }
 0x20c   :  { %4095 = vmatprep.subr.mxu0 %v4689_v6 }
 0x20e   :  { %4088 = vmatmul.mubr.msk.f32.vlgmr.msra.gmra.mxu0 %vm339_vm2, %v1355_v24  ;;  %v428_v25 = vpop.permute.xlu0 %427  ;;  %v5001_v7 = vpop.permute.xlu1 %594 }
 0x20f   :  { %4031 = vmatpush3.msra.mxu1 %v428_v25  ;;  %4096 = vmatpush3.xpose.msk.msra.mxu0 %vm339_vm2, %v1524_v23 }
 0x210   :  { %4097 = vmatprep.mubr.msk.f32.mxu0 %vm4690_vm1, %v4689_v6  ;;  %4040 = vmatprep.subr.mxu1 %v4689_v6 }
 0x212   :  { %4098 = vmatmul.mubr.msk.f32.vlgmr.msra.gmra.mxu0 %vm339_vm2, %v1522_v26 }
 0x2b6   :  { %v410_v27 = vpop.f32.mrf.mxu1 }
 0x2b7   :  { %v414_v29 = vmul.f32 0.35355338, %v410_v27 }
 0x2b8   :  { %v4029_v30 = vpop.f32.mrf.mxu1 }
 0x2b9   :  { %v415_v31 = vadd.f32 %v414_v29, %v335_v28 }
 0x2ba   :  { %v577_v32 = vpop.f32.mrf.mxu0 }
 0x2bb   :  { %v581_v33 = vmul.f32 0.35355338, %v577_v32  ;;  %v416_v34 = vsel %vm339_vm2, %v415_v31, -inf }
 0x2bc   :  { %417 = vmax.xlane.f32.xlu0 %v416_v34  ;;  %v4039_v35 = vpop.f32.mrf.mxu0 }
 0x2bd   :  { %v582_v36 = vadd.f32 %v581_v33, %v335_v28 }
 0x2be   :  { %v744_v37 = vpop.f32.mrf.mxu0 }
 0x2bf   :  { %v748_v38 = vmul.f32 0.35355338, %v744_v37  ;;  %v583_v39 = vsel %vm339_vm2, %v582_v36, -inf }
 0x2c0   :  { %584 = vmax.xlane.f32.xlu1 %v583_v39  ;;  %v4049_v40 = vpop.f32.mrf.mxu0 }
 0x2c1   :  { %v749_v41 = vadd.f32 %v748_v38, %v335_v28 }
 0x2c2   :  { %v911_v42 = vpop.f32.mrf.mxu0 }
 0x2c3   :  { %v915_v43 = vmul.f32 0.35355338, %v911_v42  ;;  %v750_v44 = vsel %vm339_vm2, %v749_v41, -inf }
 0x2c4   :  { %751 = vmax.xlane.f32.xlu0 %v750_v44  ;;  %v4059_v45 = vpop.f32.mrf.mxu0 }
 0x2c5   :  { %v916_v46 = vadd.f32 %v915_v43, %v335_v28 }
 0x2c6   :  { %v1094_v47 = vpop.f32.mrf.mxu0 }
 0x2c7   :  { %v1098_v48 = vmul.f32 0.35355338, %v1094_v47  ;;  %v917_v49 = vsel %vm339_vm2, %v916_v46, -inf }
 0x2c8   :  { %918 = vmax.xlane.f32.xlu0 %v917_v49  ;;  %v4069_v50 = vpop.f32.mrf.mxu0 }
 0x2c9   :  { %v1099_v51 = vadd.f32 %v1098_v48, %v335_v28 }
 0x2ca   :  { %v1261_v52 = vpop.f32.mrf.mxu0 }
 0x2cb   :  { %v1265_v53 = vmul.f32 0.35355338, %v1261_v52  ;;  %v1100_v54 = vsel %vm339_vm2, %v1099_v51, -inf }
 0x2cc   :  { %1101 = vmax.xlane.f32.xlu1 %v1100_v54  ;;  %v4079_v55 = vpop.f32.mrf.mxu0 }
 0x2cd   :  { %v1266_v56 = vadd.f32 %v1265_v53, %v335_v28 }
 0x2ce   :  { %v1428_v57 = vpop.f32.mrf.mxu0 }
 0x2cf   :  { %v1432_v58 = vmul.f32 0.35355338, %v1428_v57  ;;  %v1267_v59 = vsel %vm339_vm2, %v1266_v56, -inf }
 0x2d0   :  { %1268 = vmax.xlane.f32.xlu0 %v1267_v59  ;;  %v4089_v60 = vpop.f32.mrf.mxu0 }
 0x2d1   :  { %v1433_v61 = vadd.f32 %v1432_v58, %v335_v28 }
 0x2d2   :  { %v1595_v62 = vpop.f32.mrf.mxu0 }
 0x2d3   :  { %v1599_v63 = vmul.f32 0.35355338, %v1595_v62  ;;  %v1434_v0 = vsel %vm339_vm2, %v1433_v61, -inf }
 0x2d4   :  { %1435 = vmax.xlane.f32.xlu1 %v1434_v0  ;;  %v4099_v1 = vpop.f32.mrf.mxu0 }
 0x2d5   :  { %v1600_v3 = vadd.f32 %v1599_v63, %v335_v28 }
 0x2d7   :  { %v1601_v4 = vsel %vm339_vm2, %v1600_v3, -inf }
 0x2d8   :  { %1602 = vmax.xlane.f32.xlu0 %v1601_v4 }
 0x2e5   :  { %928 = vrot.lane.b32.xlu1 %v4913_v10, %s4700_s15 }
 0x2ee   :  { %761 = vrot.lane.b32.xlu0 %v4913_v10, %s4701_s28 }
 0x345   :  { %v418_v8 = vpop.xlane.xlu0 %417 }
 0x346   :  { %v419_v9 = vsub.f32 %v415_v31, %v418_v8 }
 0x348   :  { %v420_v12 = vmul.f32 1.442695, %v419_v9 }
 0x349   :  { %v585_v13 = vpop.xlane.xlu1 %584 }
 0x34a   :  { %4290 = vpow2.f32 %v420_v12  ;;  %v586_v14 = vsub.f32 %v582_v36, %v585_v13 }
 0x34c   :  { %v587_v15 = vmul.f32 1.442695, %v586_v14 }
 0x34d   :  { %v752_v16 = vpop.xlane.xlu0 %751 }
 0x34e   :  { %4292 = vpow2.f32 %v587_v15  ;;  %v753_v17 = vsub.f32 %v749_v41, %v752_v16 }
 0x350   :  { %v754_v18 = vmul.f32 1.442695, %v753_v17 }
 0x351   :  { %v919_v19 = vpop.xlane.xlu0 %918 }
 0x352   :  { %4294 = vpow2.f32 %v754_v18  ;;  %v920_v20 = vsub.f32 %v916_v46, %v919_v19 }
 0x354   :  { %v921_v21 = vmul.f32 1.442695, %v920_v20 }
 0x355   :  { %v1102_v29 = vpop.xlane.xlu1 %1101 }
 0x356   :  { %4296 = vpow2.f32 %v921_v21  ;;  %v1103_v30 = vsub.f32 %v1099_v51, %v1102_v29  ;;  %v1703_v29 = vld [vmem:[%s5399_s7] sm:$0xff] }
 0x357   :  { %v4291_v22 = vpop.eup %4290 }
 0x358   :  { %v422_v10 = vsel %vm339_vm2, %v4291_v22, 0.0  ;;  %v1104_v34 = vmul.f32 1.442695, %v1103_v30 }
 0x359   :  { %423 = vadd.xlane.f32.xlu1 %v422_v10  ;;  %v1269_v31 = vpop.xlane.xlu0 %1268 }
 0x35a   :  { %v1270_v33 = vsub.f32 %v1266_v56, %v1269_v31  ;;  %4298 = vpow2.f32 %v1104_v34  ;;  %v240_v34 = vld [vmem:[#allocation5] sm:$0xff] }
 0x35b   :  { %v4293_v23 = vpop.eup %4292 }
 0x35c   :  { %v589_v24 = vsel %vm339_vm2, %v4293_v23, 0.0  ;;  %v1271_v37 = vmul.f32 1.442695, %v1270_v33  ;;  %v1858_v33 = vld [vmem:[%s5366_s10 + $0x10] sm:$0xff] }
 0x35d   :  { %590 = vadd.xlane.f32.xlu0 %v589_v24  ;;  %v1436_v32 = vpop.xlane.xlu1 %1435 }
 0x35e   :  { %v1437_v35 = vsub.f32 %v1433_v61, %v1436_v32  ;;  %4300 = vpow2.f32 %v1271_v37  ;;  %v1859_v32 = vld [vmem:[%s5366_s10 + $0x18] sm:$0xff]  ;;  %v1856_v37 = vld [vmem:[%s5366_s10] sm:$0xff] }
 0x35f   :  { %v4295_v25 = vpop.eup %4294 }
 0x360   :  { %v756_v26 = vsel %vm339_vm2, %v4295_v25, 0.0  ;;  %v1438_v38 = vmul.f32 1.442695, %v1437_v35  ;;  %v1857_v35 = vld [vmem:[%s5366_s10 + $0x8] sm:$0xff] }
 0x361   :  { %757 = vadd.xlane.f32.xlu1 %v756_v26  ;;  %v1603_v36 = vpop.xlane.xlu0 %1602  ;;  %v929_v49 = vpop.permute.xlu1 %928  ;;  %v1706_v26 = vld [vmem:[%s5399_s7 + $0x18] sm:$0xff] }
 0x362   :  { %v1604_v39 = vsub.f32 %v1600_v3, %v1603_v36  ;;  %4302 = vpow2.f32 %v1438_v38  ;;  %4105 = vmatprep.subr.mxu0 %v1706_v26 }
 0x363   :  { %v5006_v27 = vpop.eup %4296  ;;  %4106 = vmatpush3.msra.mxu0 %v1706_v26 }
 0x364   :  { %v923_v28 = vsel %vm339_vm2, %v5006_v27, 0.0  ;;  %v1605_v40 = vmul.f32 1.442695, %v1604_v39  ;;  %v241_v39 = vld [vmem:[#allocation5 + $0x8] sm:$0xff] }
 0x365   :  { %924 = vadd.xlane.f32.xlu0 %v923_v28  ;;  %v762_v50 = vpop.permute.xlu0 %761  ;;  %v1704_v28 = vld [vmem:[%s5399_s7 + $0x8] sm:$0xff] }
 0x366   :  { %4304 = vpow2.f32 %v1605_v40 }
 0x367   :  { %v4299_v41 = vpop.eup %4298 }
 0x368   :  { %v1106_v43 = vsel %vm339_vm2, %v4299_v41, 0.0 }
 0x36b   :  { %v5014_v42 = vpop.eup %4300 }
 0x36c   :  { %v1273_v46 = vsel %vm339_vm2, %v5014_v42, 0.0 }
 0x36f   :  { %v5017_v44 = vpop.eup %4302 }
 0x370   :  { %v1440_v45 = vsel %vm339_vm2, %v5017_v44, 0.0 }
 0x372   :  { %1278 = vrot.lane.b32.xlu1 %v4927_v11, %s4698_s26 }
 0x373   :  { %v5023_v47 = vpop.eup %4304 }
 0x374   :  { %v1607_v48 = vsel %vm339_vm2, %v5023_v47, 0.0 }
 0x37b   :  { %1111 = vrot.lane.b32.xlu0 %v4927_v11, %s4699_s0 }
 0x396   :  { %1107 = vadd.xlane.f32.xlu1 %v1106_v43 }
 0x39a   :  { %1441 = vadd.xlane.f32.xlu1 %v1440_v45  ;;  %1274 = vadd.xlane.f32.xlu0 %v1273_v46 }
 0x39e   :  { %1608 = vadd.xlane.f32.xlu1 %v1607_v48 }
 0x3af   :  { %1612 = vrot.lane.b32.xlu1 %v4927_v11, %s4700_s15 }
 0x3b0   :  { %1445 = vrot.lane.b32.xlu0 %v4927_v11, %s4701_s28 }
 0x3e2   :  { %v424_v51 = vpop.xlane.xlu1 %423 }
 0x3e3   :  { %4306 = vrcp.f32 %v424_v51 }
 0x3e6   :  { %v591_v52 = vpop.xlane.xlu0 %590 }
 0x3e7   :  { %4308 = vrcp.f32 %v591_v52 }
 0x3ea   :  { %v758_v53 = vpop.xlane.xlu1 %757 }
 0x3eb   :  { %4310 = vrcp.f32 %v758_v53 }
 0x3ee   :  { %v925_v54 = vpop.xlane.xlu0 %924  ;;  %v1279_v63 = vpop.permute.xlu1 %1278 }
 0x3ef   :  { %4312 = vrcp.f32 %v925_v54 }
 0x3f0   :  { %v4307_v55 = vpop.eup %4306 }
 0x3f1   :  { %v426_v56 = vmul.f32 %v4307_v55, %v4291_v22 }
 0x3f2   :  { %v1112_v62 = vpop.permute.xlu0 %1111 }
 0x3f3   :  { %4033 = vmatmul.mubr.msk.f32.vlgmr.msra.gmra.mxu1 %vm339_vm2, %v426_v56  ;;  %v3856_v56 = vld [vmem:[%s5400_s3] ss:$0 sm:$0xff] }
 0x3f4   :  { %v4309_v57 = vpop.eup %4308  ;;  %4041 = vmatpush3.msra.mxu1 %v5001_v7  ;;  %4042 = vmatprep.mubr.msk.f32.mxu1 %vm4690_vm1, %v4689_v6 }
 0x3f5   :  { %4050 = vmatprep.subr.mxu1 %v4689_v6  ;;  %v593_v11 = vmul.f32 %v4309_v57, %v4293_v23 }
 0x3f7   :  { %4043 = vmatmul.mubr.msk.f32.vlgmr.msra.gmra.mxu1 %vm339_vm2, %v593_v11 }
 0x3f8   :  { %v4311_v58 = vpop.eup %4310  ;;  %4051 = vmatpush3.msra.mxu1 %v762_v50  ;;  %4052 = vmatprep.mubr.msk.f32.mxu1 %vm4690_vm1, %v4689_v6 }
 0x3f9   :  { %4060 = vmatprep.subr.mxu1 %v4689_v6  ;;  %v760_v59 = vmul.f32 %v4311_v58, %v4295_v25 }
 0x3fb   :  { %4053 = vmatmul.mubr.msk.f32.vlgmr.msra.gmra.mxu1 %vm339_vm2, %v760_v59 }
 0x3fc   :  { %v4313_v60 = vpop.eup %4312  ;;  %4061 = vmatpush3.msra.mxu1 %v929_v49  ;;  %4062 = vmatprep.mubr.msk.f32.mxu1 %vm4690_vm1, %v4689_v6 }
 0x3fd   :  { %4070 = vmatprep.subr.mxu1 %v4689_v6  ;;  %v927_v61 = vmul.f32 %v4313_v60, %v5006_v27  ;;  %v1705_v27 = vld [vmem:[%s5399_s7 + $0x10] sm:$0xff] }
 0x3fe   :  { %4107 = vmatprep.subr.mxu0 %v1705_v27 }
 0x3ff   :  { %4063 = vmatmul.mubr.msk.f32.vlgmr.msra.gmra.mxu1 %vm339_vm2, %v927_v61  ;;  %4108 = vmatpush3.msra.mxu0 %v1705_v27 }
 0x400   :  { %4071 = vmatpush3.msra.mxu1 %v1112_v62  ;;  %4072 = vmatprep.mubr.msk.f32.mxu1 %vm4690_vm1, %v4689_v6 }
 0x401   :  { %4080 = vmatprep.subr.mxu1 %v4689_v6  ;;  %4109 = vmatprep.subr.mxu0 %v1704_v28 }
 0x402   :  { %4110 = vmatpush3.msra.mxu0 %v1704_v28 }
 0x403   :  { %4111 = vmatprep.subr.mxu0 %v1703_v29 }
 0x404   :  { %4112 = vmatpush3.msra.mxu0 %v1703_v29 }
 0x41f   :  { %v1108_v0 = vpop.xlane.xlu1 %1107 }
 0x420   :  { %4314 = vrcp.f32 %v1108_v0 }
 0x423   :  { %v1442_v1 = vpop.xlane.xlu1 %1441  ;;  %v1275_v3 = vpop.xlane.xlu0 %1274 }
 0x424   :  { %4316 = vrcp.f32 %v1275_v3 }
 0x425   :  { %4318 = vrcp.f32 %v1442_v1  ;;  %v3861_v1 = vld [vmem:[#allocation10] ss:$0 sm:$0xff] }
 0x427   :  { %v1609_v4 = vpop.xlane.xlu1 %1608  ;;  %v1446_v14 = vpop.permute.xlu0 %1445 }
 0x428   :  { %4320 = vrcp.f32 %v1609_v4 }
 0x42b   :  { %v1613_v17 = vpop.permute.xlu1 %1612 }
 0x42d   :  { %v4315_v7 = vpop.eup %4314 }
 0x42e   :  { %v1110_v8 = vmul.f32 %v4315_v7, %v4299_v41 }
 0x430   :  { %4073 = vmatmul.mubr.msk.f32.vlgmr.msra.gmra.mxu1 %vm339_vm2, %v1110_v8 }
 0x431   :  { %4081 = vmatpush3.msra.mxu1 %v1279_v63  ;;  %4082 = vmatprep.mubr.msk.f32.mxu1 %vm4690_vm1, %v4689_v6  ;;  %v4317_v9 = vpop.eup %4316 }
 0x432   :  { %4090 = vmatprep.subr.mxu1 %v4689_v6  ;;  %v1277_v12 = vmul.f32 %v4317_v9, %v5014_v42  ;;  %v4319_v13 = vpop.eup %4318 }
 0x433   :  { %v1444_v15 = vmul.f32 %v4319_v13, %v5017_v44 }
 0x434   :  { %4083 = vmatmul.mubr.msk.f32.vlgmr.msra.gmra.mxu1 %vm339_vm2, %v1277_v12 }
 0x435   :  { %4091 = vmatpush3.msra.mxu1 %v1446_v14  ;;  %4092 = vmatprep.mubr.msk.f32.mxu1 %vm4690_vm1, %v4689_v6  ;;  %v4321_v16 = vpop.eup %4320 }
 0x436   :  { %4100 = vmatprep.subr.mxu1 %v4689_v6  ;;  %v1611_v18 = vmul.f32 %v4321_v16, %v5023_v47 }
 0x438   :  { %4093 = vmatmul.mubr.msk.f32.vlgmr.msra.gmra.mxu1 %vm339_vm2, %v1444_v15 }
 0x439   :  { %4101 = vmatpush3.msra.mxu1 %v1613_v17  ;;  %4102 = vmatprep.mubr.msk.f32.mxu1 %vm4690_vm1, %v4689_v6 }
 0x43a   :  { %4116 = vmatprep.subr.mxu1 %v1859_v32 }
 0x43c   :  { %4103 = vmatmul.mubr.msk.f32.vlgmr.msra.gmra.mxu1 %vm339_vm2, %v1611_v18 }
 0x43d   :  { %4117 = vmatpush3.msra.mxu1 %v1859_v32  ;;  %4124 = vmatprep.mubr.msk.f32.mxu1 %vm253_vm0, %v240_v34 }
 0x43e   :  { %4118 = vmatprep.subr.mxu1 %v1858_v33 }
 0x43f   :  { %4119 = vmatpush3.msra.mxu1 %v1858_v33 }
 0x440   :  { %4120 = vmatprep.subr.mxu1 %v1857_v35 }
 0x441   :  { %4121 = vmatpush3.msra.mxu1 %v1857_v35 }
 0x442   :  { %4122 = vmatprep.subr.mxu1 %v1856_v37 }
 0x443   :  { %4123 = vmatpush3.msra.mxu1 %v1856_v37 }
 0x444   :  { %4125 = vmatmul.mubr.msk.f32.vlgmr.msra.gmra.mxu1 %vm253_vm0, %v241_v39  ;;  %4138 = vmatprep.subr.mxu1 %v4689_v6 }
 0x445   :  { %4140 = vmatprep.mubr.msk.f32.mxu1 %vm4690_vm1, %v4689_v6 }
 0x4b3   :  { %v499_v19 = vpop.f32.mrf.mxu1 }
 0x4b5   :  { %v4034_v20 = vpop.f32.mrf.mxu1 }
 0x4b6   :  { %v1950_v20 = vld [vmem:[#allocation11 + $0x10] sm:$0xff] }
 0x4b7   :  { %v666_v21 = vpop.f32.mrf.mxu1 }
 0x4b8   :  { %1005 = vrot.lane.b32.xlu0 %v666_v21, %s4677_s29  ;;  %v1949_v21 = vld [vmem:[#allocation11 + $0x8] sm:$0xff] }
 0x4b9   :  { %v4044_v22 = vpop.f32.mrf.mxu1 }
 0x4ba   :  { %v1948_v22 = vld [vmem:[#allocation11] sm:$0xff] }
 0x4bb   :  { %v833_v10 = vpop.f32.mrf.mxu1 }
 0x4bc   :  { %1009 = vrot.lane.b32.xlu1 %v833_v10, %s4702_s17 }
 0x4bd   :  { %v4054_v23 = vpop.f32.mrf.mxu1 }
 0x4bf   :  { %v1000_v24 = vpop.f32.mrf.mxu1 }
 0x4c0   :  { %1013 = vrot.lane.b32.xlu1 %v1000_v24, %s4703_s24 }
 0x4c1   :  { %v4064_v25 = vpop.f32.mrf.mxu1 }
 0x4f0   :  { %v1183_v30 = vpop.f32.mrf.mxu1 }
 0x4f2   :  { %v4074_v31 = vpop.f32.mrf.mxu1 }
 0x4f4   :  { %v1350_v36 = vpop.f32.mrf.mxu1 }
 0x4f5   :  { %1689 = vrot.lane.b32.xlu0 %v1350_v36, %s4677_s29 }
 0x4f6   :  { %v4084_v38 = vpop.f32.mrf.mxu1 }
 0x4f8   :  { %v1517_v40 = vpop.f32.mrf.mxu1 }
 0x4f9   :  { %1693 = vrot.lane.b32.xlu0 %v1517_v40, %s4702_s17 }
 0x4fa   :  { %v4094_v41 = vpop.f32.mrf.mxu1 }
 0x4fb   :  { %v3860_v41 = vld [vmem:[%s5365_s9] ss:$0 sm:$0xff] }
 0x4fc   :  { %v1684_v42 = vpop.f32.mrf.mxu1 }
 0x4fd   :  { %1697 = vrot.lane.b32.xlu1 %v1684_v42, %s4703_s24 }
 0x4fe   :  { %v4104_v43 = vpop.f32.mrf.mxu1 }
 0x504   :  { %v4126_v0 = vpop.f32.mrf.mxu1 }
 0x505   :  { %v5117_v7 = vadd.f32 %v4126_v0, %v3861_v1 }
 0x506   :  { %v1939_v3 = vpop.f32.mrf.mxu1 }
 0x507   :  { %v1940_v4 = vadd.f32 %v3861_v1, %v1939_v3  ;;  %v3864_v3 = vld [vmem:[#allocation13] ss:$0 sm:$0xff] }
 0x52a   :  { %v1006_v44 = vpop.permute.xlu0 %1005 }
 0x52b   :  { %v1016_v46 = vsel %vm339_vm2, %v499_v19, %v1006_v44  ;;  %v1951_v19 = vld [vmem:[#allocation11 + $0x18] sm:$0xff] }
 0x52c   :  { %4127 = vmatprep.subr.mxu0 %v1951_v19 }
 0x52e   :  { %v1010_v45 = vpop.permute.xlu1 %1009 }
 0x52f   :  { %v1018_v47 = vsel %vm1017_vm3, %v1016_v46, %v1010_v45 }
 0x532   :  { %v1014_v48 = vpop.permute.xlu1 %1013 }
 0x533   :  { %v1020_v49 = vsel %vm1019_vm4, %v1018_v47, %v1014_v48 }
 0x534   :  { %4113 = vmatprep.mubr.msk.f32.mxu0 %vm253_vm0, %v1020_v49 }
 0x567   :  { %v1690_v50 = vpop.permute.xlu0 %1689 }
 0x568   :  { %v1700_v52 = vsel %vm339_vm2, %v1183_v30, %v1690_v50 }
 0x56b   :  { %v1694_v51 = vpop.permute.xlu0 %1693 }
 0x56c   :  { %v1701_v53 = vsel %vm1017_vm3, %v1700_v52, %v1694_v51 }
 0x56f   :  { %v1698_v54 = vpop.permute.xlu1 %1697 }
 0x570   :  { %v1702_v55 = vsel %vm1019_vm4, %v1701_v53, %v1698_v54  ;;  %v5172_v54 = vld [vmem:[#allocation8] sm:$0xff] }
 0x571   :  { %4114 = vmatmul.mubr.msk.f32.vlgmr.msra.gmra.mxu0 %vm253_vm0, %v1702_v55 }
 0x572   :  { %4128 = vmatpush3.msra.mxu0 %v1951_v19 }
 0x573   :  { %4129 = vmatprep.subr.mxu0 %v1950_v20 }
 0x574   :  { %4130 = vmatpush3.msra.mxu0 %v1950_v20 }
 0x575   :  { %4131 = vmatprep.subr.mxu0 %v1949_v21 }
 0x576   :  { %4132 = vmatpush3.msra.mxu0 %v1949_v21 }
 0x577   :  { %4133 = vmatprep.subr.mxu0 %v1948_v22 }
 0x578   :  { %4134 = vmatpush3.msra.mxu0 %v1948_v22 }
 0x579   :  { %4148 = vmatprep.subr.mxu0 %v4689_v6 }
 0x631   :  { %v4115_v57 = vpop.f32.mrf.mxu0 }
 0x632   :  { %v1792_v11 = vadd.f32 %v4115_v57, %v3856_v56 }
 0x633   :  { %v1786_v58 = vpop.f32.mrf.mxu0 }
 0x634   :  { %v1787_v59 = vadd.f32 %v3856_v56, %v1786_v58  ;;  %v1796_v60 = vadd.f32 %v1792_v11, %v4900_v5 }
 0x636   :  { %v1802_v61 = vsel %vm253_vm0, %v1796_v60, 0.0  ;;  %v1795_v62 = vadd.f32 %v1787_v59, %v4890_v2 }
 0x637   :  { %1803 = vadd.xlane.f32.xlu1 %v1802_v61 }
 0x638   :  { %v1799_v63 = vsel %vm253_vm0, %v1795_v62, 0.0 }
 0x639   :  { %1800 = vadd.xlane.f32.xlu0 %v1799_v63 }
 0x648   :  { %2042 = vrot.lane.b32.xlu1 %v1940_v4, %s4692_s1 }
 0x64c   :  { %2204 = vrot.lane.b32.xlu1 %v1940_v4, %s4691_s4 }
 0x650   :  { %2374 = vrot.lane.b32.xlu1 %v1940_v4, %s4693_s13 }
 0x654   :  { %2541 = vrot.lane.b32.xlu1 %v1940_v4, %s4695_s27 }
 0x658   :  { %2722 = vrot.lane.b32.xlu1 %v5117_v7, %s4692_s1  ;;  %s4704_s1 = smov [#allocation23]  }
 0x65c   :  { %2884 = vrot.lane.b32.xlu1 %v5117_v7, %s4691_s4 }
 0x660   :  { %3052 = vrot.lane.b32.xlu1 %v5117_v7, %s4696_s14 }
 0x664   :  { %3219 = vrot.lane.b32.xlu1 %v5117_v7, %s4697_s6 }
 0x6c0   :  { %v1804_v2 = vpop.xlane.xlu1 %1803 }
 0x6c1   :  { %v1807_v5 = vmul.f32 0.03125, %v1804_v2 }
 0x6c2   :  { %v1801_v8 = vpop.xlane.xlu0 %1800 }
 0x6c3   :  { %v1806_v9 = vmul.f32 0.03125, %v1801_v8  ;;  %v5128_v13 = vsub.f32 %v1796_v60, %v1807_v5 }
 0x6c4   :  { %v2043_v12 = vpop.permute.xlu1 %2042 }
 0x6c5   :  { %v1808_v14 = vsub.f32 %v1795_v62, %v1806_v9  ;;  %4139 = vmatpush3.xpose.msk.msra.mxu1 %vm339_vm2, %v2043_v12  ;;  %v1811_v17 = vmul.f32 %v5128_v13, %v5128_v13 }
 0x6c6   :  { %4143 = vmatprep.subr.mxu1 %v4689_v6 }
 0x6c7   :  { %v1810_v15 = vmul.f32 %v1808_v14, %v1808_v14  ;;  %v1815_v18 = vsel %vm253_vm0, %v1811_v17, 0.0 }
 0x6c8   :  { %4141 = vmatmul.mubr.msk.f32.vlgmr.msra.gmra.mxu1 %vm339_vm2, %v1940_v4  ;;  %v2205_v42 = vpop.permute.xlu1 %2204 }
 0x6c9   :  { %v1812_v16 = vsel %vm253_vm0, %v1810_v15, 0.0  ;;  %4145 = vmatprep.mubr.msk.f32.mxu1 %vm4690_vm1, %v4689_v6 }
 0x6ca   :  { %1813 = vadd.xlane.f32.xlu0 %v1812_v16 }
 0x6cc   :  { %v2375_v49 = vpop.permute.xlu1 %2374 }
 0x6ce   :  { %1816 = vadd.xlane.f32.xlu0 %v1815_v18 }
 0x6d0   :  { %v2542_v52 = vpop.permute.xlu1 %2541 }
 0x6d4   :  { %v2723_v58 = vpop.permute.xlu1 %2722 }
 0x6d8   :  { %v2885_v61 = vpop.permute.xlu1 %2884 }
 0x6dc   :  { %v3053_v63 = vpop.permute.xlu1 %3052 }
 0x6e0   :  { %v3220_v1 = vpop.permute.xlu1 %3219 }
 0x6e4   :  { %2206 = vrot.lane.b32.xlu0 %v1940_v4, %s4694_s5 }
 0x6e8   :  { %2372 = vrot.lane.b32.xlu0 %v1940_v4, %s4696_s14 }
 0x6ec   :  { %2539 = vrot.lane.b32.xlu0 %v1940_v4, %s4697_s6 }
 0x6f0   :  { %2886 = vrot.lane.b32.xlu0 %v5117_v7, %s4694_s5  ;;  %s5401_s5 = sld [smem:[#allocation40_spill]] }
 0x6f4   :  { %3054 = vrot.lane.b32.xlu0 %v5117_v7, %s4693_s13  ;;  %s3811_s13 = sshll.u32 %s4704_s1, 4  ;;  %s3812_s13 = int_to_ptr.vmem [resolvable:$true] %s3811_s13 }
 0x6f5   :  { %p4643_p10 = scmp.lt.s32.totalorder %s3812_s13, %s3812_s13 }
 0x6f6   :  { %v3859_v39 = vld [vmem:[%s5401_s5] ss:$0 sm:$0xff]  ;;  %s4638_s5 = scalar_lea.vmem %s3812_s13, 256 }
 0x6f7   :  { %p4639_p9 = scmp.ne.s32.totalorder %s3812_s13, %s4638_s5  ;;  %p4644_p11 = scmp.lt.s32.totalorder %s4638_s5, %s4638_s5 }
 0x6f8   :  { %3221 = vrot.lane.b32.xlu0 %v5117_v7, %s4695_s27 }
 0x6f9   :  { %p4645_p12 = por %p4644_p11, %p4643_p10 }
 0x6fb   :  { %p4646_p13 = pnand %p4645_p12, %p4639_p9 }
 0x753   :  { %v1814_v10 = vpop.xlane.xlu0 %1813 }
 0x754   :  { %v1818_v23 = vmul.f32 0.03125, %v1814_v10 }
 0x756   :  { %v1820_v24 = vadd.f32 1e-06, %v1818_v23 }
 0x757   :  { %v1817_v25 = vpop.xlane.xlu0 %1816 }
 0x758   :  { %4322 = vrsqrt.f32 %v1820_v24  ;;  %v1819_v26 = vmul.f32 0.03125, %v1817_v25  ;;  %vm1824_vm5 = vcmp.eq.f32.partialorder %v1820_v24, inf  ;;  %v1827_v30 = vand.u32 2147483648, %v1820_v24 }
 0x759   :  { %vm1826_vm6 = vcmp.eq.f32.partialorder %v1820_v24, 0.0 }
 0x75a   :  { %v1821_v27 = vadd.f32 1e-06, %v1819_v26 }
 0x75b   :  { %v2207_v46 = vpop.permute.xlu0 %2206 }
 0x75c   :  { %4324 = vrsqrt.f32 %v1821_v27  ;;  %vm1831_vm7 = vcmp.eq.f32.partialorder %v1821_v27, inf  ;;  %v1834_v35 = vand.u32 2147483648, %v1821_v27  ;;  %vm1833_vm8 = vcmp.eq.f32.partialorder %v1821_v27, 0.0 }
 0x75f   :  { %v2373_v51 = vpop.permute.xlu0 %2372 }
 0x763   :  { %v2540_v55 = vpop.permute.xlu0 %2539 }
 0x765   :  { %v4323_v28 = vpop.eup %4322 }
 0x766   :  { %v1823_v29 = vmul.f32 %v4323_v28, %v1820_v24 }
 0x767   :  { %v2887_v60 = vpop.permute.xlu0 %2886 }
 0x768   :  { %v1825_v31 = vsel %vm1824_vm5, %v1820_v24, %v1823_v29 }
 0x769   :  { %v1828_v32 = vsel %vm1826_vm6, %v1827_v30, %v1825_v31  ;;  %v4325_v33 = vpop.eup %4324 }
 0x76a   :  { %4326 = vrcp.f32 %v1828_v32  ;;  %v1830_v34 = vmul.f32 %v4325_v33, %v1821_v27 }
 0x76b   :  { %v3055_v62 = vpop.permute.xlu0 %3054 }
 0x76c   :  { %v1832_v36 = vsel %vm1831_vm7, %v1821_v27, %v1830_v34 }
 0x76d   :  { %v1835_v37 = vsel %vm1833_vm8, %v1834_v35, %v1832_v36 }
 0x76e   :  { %4328 = vrcp.f32 %v1835_v37 }
 0x76f   :  { %v3222_v0 = vpop.permute.xlu0 %3221 }
 0x777   :  { %v4327_v38 = vpop.eup %4326 }
 0x778   :  { %v1837_v40 = vmul.f32 %v4327_v38, %v1808_v14 }
 0x77a   :  { %v1846_v43 = vmul.f32 %v3859_v39, %v1837_v40 }
 0x77b   :  { %v4329_v44 = vpop.eup %4328 }
 0x77c   :  { %v5155_v45 = vadd.f32 %v3860_v41, %v1846_v43  ;;  %v1839_v47 = vmul.f32 %v4329_v44, %v5128_v13 }
 0x77e   :  { %4135 = vmatprep.mubr.msk.f32.mxu0 %vm253_vm0, %v5155_v45  ;;  %v1847_v48 = vmul.f32 %v3859_v39, %v1839_v47 }
 0x780   :  { %v5160_v50 = vadd.f32 %v3860_v41, %v1847_v48 }
 0x782   :  { %4136 = vmatmul.mubr.msk.f32.vlgmr.msra.gmra.mxu0 %vm253_vm0, %v5160_v50 }
 0x783   :  { %4149 = vmatpush3.xpose.msk.msra.mxu0 %vm339_vm2, %v2207_v46  ;;  %4150 = vmatprep.mubr.msk.f32.mxu0 %vm4690_vm1, %v4689_v6 }
 0x784   :  { %4158 = vmatprep.subr.mxu0 %v4689_v6 }
 0x786   :  { %4151 = vmatmul.mubr.msk.f32.vlgmr.msra.gmra.mxu0 %vm339_vm2, %v2205_v42 }
 0x787   :  { %4159 = vmatpush3.xpose.msk.msra.mxu0 %vm339_vm2, %v2375_v49  ;;  %4160 = vmatprep.mubr.msk.f32.mxu0 %vm4690_vm1, %v4689_v6 }
 0x788   :  { %v2114_v53 = vpop.f32.mrf.mxu1  ;;  %4168 = vmatprep.subr.mxu0 %v4689_v6 }
 0x789   :  { %v2118_v56 = vmul.f32 0.35355338, %v2114_v53 }
 0x78a   :  { %v4142_v57 = vpop.f32.mrf.mxu1  ;;  %4161 = vmatmul.mubr.msk.f32.vlgmr.msra.gmra.mxu0 %vm339_vm2, %v2373_v51 }
 0x78b   :  { %v2119_v11 = vadd.f32 %v2118_v56, %v5172_v54  ;;  %4169 = vmatpush3.xpose.msk.msra.mxu0 %vm339_vm2, %v2542_v52  ;;  %4170 = vmatprep.mubr.msk.f32.mxu0 %vm4690_vm1, %v4689_v6 }
 0x78c   :  { %4178 = vmatprep.subr.mxu0 %v4689_v6 }
 0x78d   :  { %v2120_v59 = vsel %vm339_vm2, %v2119_v11, -inf }
 0x78e   :  { %2121 = vmax.xlane.f32.xlu0 %v2120_v59  ;;  %4171 = vmatmul.mubr.msk.f32.vlgmr.msra.gmra.mxu0 %vm339_vm2, %v2540_v55 }
 0x78f   :  { %4179 = vmatpush3.xpose.msk.msra.mxu0 %vm339_vm2, %v2723_v58  ;;  %4180 = vmatprep.mubr.msk.f32.mxu0 %vm4690_vm1, %v4689_v6 }
 0x790   :  { %4188 = vmatprep.subr.mxu0 %v4689_v6 }
 0x792   :  { %4181 = vmatmul.mubr.msk.f32.vlgmr.msra.gmra.mxu0 %vm339_vm2, %v5117_v7 }
 0x793   :  { %4189 = vmatpush3.xpose.msk.msra.mxu0 %vm339_vm2, %v2887_v60  ;;  %4190 = vmatprep.mubr.msk.f32.mxu0 %vm4690_vm1, %v4689_v6 }
 0x794   :  { %4198 = vmatprep.subr.mxu0 %v4689_v6 }
 0x796   :  { %4191 = vmatmul.mubr.msk.f32.vlgmr.msra.gmra.mxu0 %vm339_vm2, %v2885_v61 }
 0x797   :  { %4199 = vmatpush3.xpose.msk.msra.mxu0 %vm339_vm2, %v3055_v62  ;;  %4200 = vmatprep.mubr.msk.f32.mxu0 %vm4690_vm1, %v4689_v6 }
 0x798   :  { %4208 = vmatprep.subr.mxu0 %v4689_v6 }
 0x79a   :  { %4201 = vmatmul.mubr.msk.f32.vlgmr.msra.gmra.mxu0 %vm339_vm2, %v3053_v63 }
 0x79b   :  { %4209 = vmatpush3.xpose.msk.msra.mxu0 %vm339_vm2, %v3222_v0  ;;  %4210 = vmatprep.mubr.msk.f32.mxu0 %vm4690_vm1, %v4689_v6 }
 0x79e   :  { %4211 = vmatmul.mubr.msk.f32.vlgmr.msra.gmra.mxu0 %vm339_vm2, %v3220_v1 }
 0x817   :  { %v2122_v12 = vpop.xlane.xlu0 %2121 }
 0x818   :  { %v2123_v16 = vsub.f32 %v2119_v11, %v2122_v12 }
 0x81a   :  { %v2124_v22 = vmul.f32 1.442695, %v2123_v16 }
 0x81c   :  { %4330 = vpow2.f32 %v2124_v22 }
 0x829   :  { %v4331_v44 = vpop.eup %4330 }
 0x82a   :  { %v2126_v49 = vsel %vm339_vm2, %v4331_v44, 0.0 }
 0x842   :  { %v4137_v4 = vpop.f32.mrf.mxu0 }
 0x843   :  { %v5203_v7 = vadd.f32 %v4137_v4, %v3864_v3 }
 0x844   :  { %v2031_v2 = vpop.f32.mrf.mxu0 }
 0x845   :  { %v5205_v5 = vadd.f32 %v3864_v3, %v2031_v2 }
 0x846   :  { %v2278_v8 = vpop.f32.mrf.mxu0 }
 0x847   :  { %v2282_v9 = vmul.f32 0.35355338, %v2278_v8  ;;  %4144 = vmatpush3.msra.mxu1 %v5205_v5 }
 0x848   :  { %v4152_v13 = vpop.f32.mrf.mxu0  ;;  %4153 = vmatprep.subr.mxu1 %v4689_v6 }
 0x849   :  { %v2283_v14 = vadd.f32 %v2282_v9, %v5172_v54 }
 0x84a   :  { %v2446_v15 = vpop.f32.mrf.mxu0 }
 0x84b   :  { %v2450_v17 = vmul.f32 0.35355338, %v2446_v15  ;;  %v2284_v18 = vsel %vm339_vm2, %v2283_v14, -inf }
 0x84c   :  { %2285 = vmax.xlane.f32.xlu1 %v2284_v18  ;;  %v4162_v19 = vpop.f32.mrf.mxu0 }
 0x84d   :  { %v2451_v20 = vadd.f32 %v2450_v17, %v5172_v54 }
 0x84e   :  { %v2613_v21 = vpop.f32.mrf.mxu0 }
 0x84f   :  { %v2617_v10 = vmul.f32 0.35355338, %v2613_v21  ;;  %v2452_v23 = vsel %vm339_vm2, %v2451_v20, -inf }
 0x850   :  { %2453 = vmax.xlane.f32.xlu0 %v2452_v23  ;;  %v4172_v24 = vpop.f32.mrf.mxu0 }
 0x851   :  { %v5214_v25 = vadd.f32 %v2617_v10, %v5172_v54 }
 0x852   :  { %v2794_v26 = vpop.f32.mrf.mxu0 }
 0x853   :  { %v2798_v27 = vmul.f32 0.35355338, %v2794_v26  ;;  %v2619_v28 = vsel %vm339_vm2, %v5214_v25, -inf }
 0x854   :  { %2620 = vmax.xlane.f32.xlu0 %v2619_v28  ;;  %v4182_v29 = vpop.f32.mrf.mxu0 }
 0x855   :  { %v2799_v30 = vadd.f32 %v2798_v27, %v5172_v54 }
 0x856   :  { %v2958_v31 = vpop.f32.mrf.mxu0 }
 0x857   :  { %v2962_v32 = vmul.f32 0.35355338, %v2958_v31  ;;  %v2800_v33 = vsel %vm339_vm2, %v2799_v30, -inf }
 0x858   :  { %2801 = vmax.xlane.f32.xlu1 %v2800_v33  ;;  %v4192_v34 = vpop.f32.mrf.mxu0 }
 0x859   :  { %v2963_v35 = vadd.f32 %v2962_v32, %v5172_v54 }
 0x85a   :  { %v3126_v36 = vpop.f32.mrf.mxu0 }
 0x85b   :  { %v3130_v37 = vmul.f32 0.35355338, %v3126_v36  ;;  %v2964_v38 = vsel %vm339_vm2, %v2963_v35, -inf }
 0x85c   :  { %2965 = vmax.xlane.f32.xlu0 %v2964_v38  ;;  %v4202_v39 = vpop.f32.mrf.mxu0 }
 0x85d   :  { %v3131_v40 = vadd.f32 %v3130_v37, %v5172_v54 }
 0x85e   :  { %v3293_v41 = vpop.f32.mrf.mxu0 }
 0x85f   :  { %v3297_v42 = vmul.f32 0.35355338, %v3293_v41  ;;  %v3132_v43 = vsel %vm339_vm2, %v3131_v40, -inf }
 0x860   :  { %3133 = vmax.xlane.f32.xlu1 %v3132_v43  ;;  %v4212_v46 = vpop.f32.mrf.mxu0 }
 0x861   :  { %v3298_v47 = vadd.f32 %v3297_v42, %v5172_v54 }
 0x863   :  { %v3299_v48 = vsel %vm339_vm2, %v3298_v47, -inf }
 0x864   :  { %3300 = vmax.xlane.f32.xlu0 %v3299_v48  ;;  %2127 = vadd.xlane.f32.xlu1 %v2126_v49 }
 0x875   :  { %2296 = vrot.lane.b32.xlu1 %v5205_v5, %s4691_s4 }
 0x879   :  { %2630 = vrot.lane.b32.xlu1 %v5205_v5, %s4697_s6 }
 0x8d5   :  { %v2286_v51 = vpop.xlane.xlu1 %2285 }
 0x8d6   :  { %v2287_v52 = vsub.f32 %v2283_v14, %v2286_v51 }
 0x8d8   :  { %v2288_v53 = vmul.f32 1.442695, %v2287_v52 }
 0x8d9   :  { %v2454_v55 = vpop.xlane.xlu0 %2453 }
 0x8da   :  { %4332 = vpow2.f32 %v2288_v53  ;;  %v2455_v56 = vsub.f32 %v2451_v20, %v2454_v55 }
 0x8dc   :  { %v2456_v57 = vmul.f32 1.442695, %v2455_v56 }
 0x8dd   :  { %v2621_v3 = vpop.xlane.xlu0 %2620 }
 0x8de   :  { %4334 = vpow2.f32 %v2456_v57  ;;  %v2622_v4 = vsub.f32 %v5214_v25, %v2621_v3 }
 0x8e0   :  { %v2623_v9 = vmul.f32 1.442695, %v2622_v4 }
 0x8e1   :  { %v2802_v54 = vpop.xlane.xlu1 %2801 }
 0x8e2   :  { %v2803_v8 = vsub.f32 %v2799_v30, %v2802_v54 }
 0x8e4   :  { %v2804_v14 = vmul.f32 1.442695, %v2803_v8 }
 0x8e5   :  { %v2966_v2 = vpop.xlane.xlu0 %2965 }
 0x8e6   :  { %v2967_v12 = vsub.f32 %v2963_v35, %v2966_v2 }
 0x8e7   :  { %v4333_v11 = vpop.eup %4332 }
 0x8e8   :  { %v2290_v58 = vsel %vm339_vm2, %v4333_v11, 0.0  ;;  %v2968_v16 = vmul.f32 1.442695, %v2967_v12 }
 0x8e9   :  { %v3134_v59 = vpop.xlane.xlu1 %3133  ;;  %2291 = vadd.xlane.f32.xlu0 %v2290_v58 }
 0x8ea   :  { %v3135_v15 = vsub.f32 %v3131_v40, %v3134_v59 }
 0x8eb   :  { %v4335_v60 = vpop.eup %4334 }
 0x8ec   :  { %v2458_v61 = vsel %vm339_vm2, %v4335_v60, 0.0 }
 0x8ed   :  { %v2128_v62 = vpop.xlane.xlu1 %2127  ;;  %2459 = vadd.xlane.f32.xlu1 %v2458_v61  ;;  %v3301_v13 = vpop.xlane.xlu0 %3300  ;;  %v3403_v61 = vld [vmem:[#allocation14 + $0x10] sm:$0xff] }
 0x8ee   :  { %4336 = vrcp.f32 %v2128_v62  ;;  %v3302_v17 = vsub.f32 %v3298_v47, %v3301_v13 }
 0x8ef   :  { %4338 = vpow2.f32 %v2623_v9 }
 0x8f0   :  { %4340 = vpow2.f32 %v2804_v14  ;;  %v3303_v18 = vmul.f32 1.442695, %v3302_v17 }
 0x8f1   :  { %v2297_v1 = vpop.permute.xlu1 %2296  ;;  %4342 = vpow2.f32 %v2968_v16 }
 0x8f5   :  { %v2631_v28 = vpop.permute.xlu1 %2630 }
 0x8fb   :  { %v4337_v63 = vpop.eup %4336 }
 0x8fc   :  { %v2130_v0 = vmul.f32 %v4337_v63, %v4331_v44  ;;  %v4339_v19 = vpop.eup %4338  ;;  %v3401_v63 = vld [vmem:[#allocation14] sm:$0xff] }
 0x8fd   :  { %v4341_v20 = vpop.eup %4340  ;;  %v2625_v21 = vsel %vm339_vm2, %v4339_v19, 0.0 }
 0x8fe   :  { %2976 = vrot.lane.b32.xlu1 %v5203_v7, %s4691_s4  ;;  %4146 = vmatmul.mubr.msk.f32.vlgmr.msra.gmra.mxu1 %vm339_vm2, %v2130_v0  ;;  %v4343_v22 = vpop.eup %4342  ;;  %v2806_v23 = vsel %vm339_vm2, %v4341_v20, 0.0 }
 0x8ff   :  { %2463 = vrot.lane.b32.xlu0 %v5205_v5, %s4696_s14  ;;  %4154 = vmatpush3.msra.mxu1 %v2297_v1  ;;  %v3136_v5 = vmul.f32 1.442695, %v3135_v15  ;;  %v2970_v24 = vsel %vm339_vm2, %v4343_v22, 0.0 }
 0x900   :  { %4155 = vmatprep.mubr.msk.f32.mxu1 %vm4690_vm1, %v4689_v6  ;;  %4163 = vmatprep.subr.mxu1 %v4689_v6 }
 0x901   :  { %4344 = vpow2.f32 %v3136_v5 }
 0x902   :  { %4346 = vpow2.f32 %v3303_v18 }
 0x90e   :  { %v5243_v10 = vpop.eup %4344 }
 0x90f   :  { %v5247_v25 = vpop.eup %4346  ;;  %v3138_v26 = vsel %vm339_vm2, %v5243_v10, 0.0 }
 0x910   :  { %v3305_v27 = vsel %vm339_vm2, %v5247_v25, 0.0 }
 0x91e   :  { %2626 = vadd.xlane.f32.xlu0 %v2625_v21 }
 0x922   :  { %2807 = vadd.xlane.f32.xlu1 %v2806_v23  ;;  %2971 = vadd.xlane.f32.xlu0 %v2970_v24  ;;  %v3891_v24 = vld [vmem:[#allocation16] ss:$0 sm:$0xff] }
 0x926   :  { %3139 = vadd.xlane.f32.xlu1 %v3138_v26  ;;  %3306 = vadd.xlane.f32.xlu0 %v3305_v27 }
 0x937   :  { %3310 = vrot.lane.b32.xlu1 %v5203_v7, %s4697_s6 }
 0x93c   :  { %3143 = vrot.lane.b32.xlu0 %v5203_v7, %s4696_s14 }
 0x972   :  { %v2292_v29 = vpop.xlane.xlu0 %2291 }
 0x973   :  { %4348 = vrcp.f32 %v2292_v29 }
 0x976   :  { %v2460_v30 = vpop.xlane.xlu1 %2459  ;;  %v2464_v33 = vpop.permute.xlu0 %2463 }
 0x977   :  { %4350 = vrcp.f32 %v2460_v30 }
 0x97a   :  { %v2977_v36 = vpop.permute.xlu1 %2976 }
 0x980   :  { %v4349_v31 = vpop.eup %4348 }
 0x981   :  { %v2294_v32 = vmul.f32 %v4349_v31, %v4333_v11 }
 0x983   :  { %4156 = vmatmul.mubr.msk.f32.vlgmr.msra.gmra.mxu1 %vm339_vm2, %v2294_v32 }
 0x984   :  { %v4351_v34 = vpop.eup %4350  ;;  %4164 = vmatpush3.msra.mxu1 %v2464_v33  ;;  %4165 = vmatprep.mubr.msk.f32.mxu1 %vm4690_vm1, %v4689_v6 }
 0x985   :  { %4173 = vmatprep.subr.mxu1 %v4689_v6  ;;  %v2462_v35 = vmul.f32 %v4351_v34, %v4335_v60  ;;  %v3404_v60 = vld [vmem:[#allocation14 + $0x18] sm:$0xff] }
 0x986   :  { %4218 = vmatprep.subr.mxu0 %v3404_v60 }
 0x987   :  { %4166 = vmatmul.mubr.msk.f32.vlgmr.msra.gmra.mxu1 %vm339_vm2, %v2462_v35  ;;  %4219 = vmatpush3.msra.mxu0 %v3404_v60 }
 0x988   :  { %4174 = vmatpush3.msra.mxu1 %v2631_v28  ;;  %4175 = vmatprep.mubr.msk.f32.mxu1 %vm4690_vm1, %v4689_v6 }
 0x989   :  { %4183 = vmatprep.subr.mxu1 %v4689_v6  ;;  %4220 = vmatprep.subr.mxu0 %v3403_v61 }
 0x98a   :  { %4221 = vmatpush3.msra.mxu0 %v3403_v61 }
 0x9a7   :  { %v2627_v37 = vpop.xlane.xlu0 %2626 }
 0x9a8   :  { %4352 = vrcp.f32 %v2627_v37 }
 0x9ab   :  { %v2808_v38 = vpop.xlane.xlu1 %2807  ;;  %v2972_v39 = vpop.xlane.xlu0 %2971 }
 0x9ac   :  { %4354 = vrcp.f32 %v2808_v38 }
 0x9ad   :  { %4356 = vrcp.f32 %v2972_v39 }
 0x9af   :  { %v3140_v40 = vpop.xlane.xlu1 %3139  ;;  %v3307_v41 = vpop.xlane.xlu0 %3306 }
 0x9b0   :  { %4358 = vrcp.f32 %v3140_v40 }
 0x9b1   :  { %4360 = vrcp.f32 %v3307_v41  ;;  %v3556_v41 = vld [vmem:[#allocation20 + $0x18] sm:$0xff] }
 0x9b3   :  { %v3144_v52 = vpop.permute.xlu0 %3143  ;;  %v3311_v56 = vpop.permute.xlu1 %3310 }
 0x9b5   :  { %v4353_v42 = vpop.eup %4352 }
 0x9b6   :  { %v2629_v43 = vmul.f32 %v4353_v42, %v4339_v19  ;;  %v3555_v42 = vld [vmem:[#allocation20 + $0x10] sm:$0xff] }
 0x9b8   :  { %4176 = vmatmul.mubr.msk.f32.vlgmr.msra.gmra.mxu1 %vm339_vm2, %v2629_v43  ;;  %v3554_v43 = vld [vmem:[#allocation20 + $0x8] sm:$0xff] }
 0x9b9   :  { %v4355_v44 = vpop.eup %4354  ;;  %4184 = vmatpush3.msra.mxu1 %v5203_v7  ;;  %4185 = vmatprep.mubr.msk.f32.mxu1 %vm4690_vm1, %v4689_v6 }
 0x9ba   :  { %4193 = vmatprep.subr.mxu1 %v4689_v6  ;;  %v2810_v46 = vmul.f32 %v4355_v44, %v4341_v20  ;;  %v4357_v47 = vpop.eup %4356  ;;  %v3553_v44 = vld [vmem:[#allocation20] sm:$0xff] }
 0x9bb   :  { %v2974_v48 = vmul.f32 %v4357_v47, %v4343_v22  ;;  %v3653_v47 = vld [vmem:[%s5376_s20 + $0x30] sm:$0xff] }
 0x9bc   :  { %4186 = vmatmul.mubr.msk.f32.vlgmr.msra.gmra.mxu1 %vm339_vm2, %v2810_v46  ;;  %v3654_v46 = vld [vmem:[%s5376_s20 + $0x38] sm:$0xff] }
 0x9bd   :  { %4194 = vmatpush3.msra.mxu1 %v2977_v36  ;;  %4195 = vmatprep.mubr.msk.f32.mxu1 %vm4690_vm1, %v4689_v6  ;;  %v4359_v49 = vpop.eup %4358 }
 0x9be   :  { %4203 = vmatprep.subr.mxu1 %v4689_v6  ;;  %v2200_v51 = vpop.f32.mrf.mxu1  ;;  %v3142_v53 = vmul.f32 %v4359_v49, %v5243_v10  ;;  %v4361_v55 = vpop.eup %4360  ;;  %v3651_v49 = vld [vmem:[%s5376_s20 + $0x20] sm:$0xff] }
 0x9bf   :  { %v3309_v57 = vmul.f32 %v4361_v55, %v5247_v25 }
 0x9c0   :  { %4196 = vmatmul.mubr.msk.f32.vlgmr.msra.gmra.mxu1 %vm339_vm2, %v2974_v48  ;;  %v4147_v7 = vpop.f32.mrf.mxu1  ;;  %v3652_v48 = vld [vmem:[%s5376_s20 + $0x28] sm:$0xff] }
 0x9c1   :  { %4204 = vmatpush3.msra.mxu1 %v3144_v52  ;;  %4205 = vmatprep.mubr.msk.f32.mxu1 %vm4690_vm1, %v4689_v6 }
 0x9c2   :  { %4213 = vmatprep.subr.mxu1 %v4689_v6 }
 0x9c4   :  { %4206 = vmatmul.mubr.msk.f32.vlgmr.msra.gmra.mxu1 %vm339_vm2, %v3142_v53 }
 0x9c5   :  { %4214 = vmatpush3.msra.mxu1 %v3311_v56  ;;  %4215 = vmatprep.mubr.msk.f32.mxu1 %vm4690_vm1, %v4689_v6  ;;  %v3402_v6 = vld [vmem:[#allocation14 + $0x8] sm:$0xff] }
 0x9c6   :  { %4222 = vmatprep.subr.mxu0 %v3402_v6  ;;  %4229 = vmatprep.subr.mxu1 %v3556_v41 }
 0x9c7   :  { %4223 = vmatpush3.msra.mxu0 %v3402_v6 }
 0x9c8   :  { %4216 = vmatmul.mubr.msk.f32.vlgmr.msra.gmra.mxu1 %vm339_vm2, %v3309_v57  ;;  %4224 = vmatprep.subr.mxu0 %v3401_v63 }
 0x9c9   :  { %4225 = vmatpush3.msra.mxu0 %v3401_v63  ;;  %4230 = vmatpush3.msra.mxu1 %v3556_v41 }
 0x9ca   :  { %4231 = vmatprep.subr.mxu1 %v3555_v42  ;;  %4240 = vmatprep.subr.mxu0 %v3654_v46 }
 0x9cb   :  { %4232 = vmatpush3.msra.mxu1 %v3555_v42 }
 0x9cc   :  { %4233 = vmatprep.subr.mxu1 %v3554_v43 }
 0x9cd   :  { %4234 = vmatpush3.msra.mxu1 %v3554_v43 }
 0x9ce   :  { %4235 = vmatprep.subr.mxu1 %v3553_v44 }
 0x9cf   :  { %4236 = vmatpush3.msra.mxu1 %v3553_v44 }
 0xa43   :  { %v2368_v54 = vpop.f32.mrf.mxu1 }
 0xa44   :  { %2707 = vrot.lane.b32.xlu0 %v2368_v54, %s4677_s29 }
 0xa45   :  { %v4157_v11 = vpop.f32.mrf.mxu1 }
 0xa47   :  { %v2535_v58 = vpop.f32.mrf.mxu1 }
 0xa48   :  { %2711 = vrot.lane.b32.xlu1 %v2535_v58, %s4702_s17 }
 0xa49   :  { %v4167_v59 = vpop.f32.mrf.mxu1 }
 0xa78   :  { %v2702_v62 = vpop.f32.mrf.mxu1 }
 0xa79   :  { %2715 = vrot.lane.b32.xlu1 %v2702_v62, %s4703_s24 }
 0xa7a   :  { %v4177_v0 = vpop.f32.mrf.mxu1 }
 0xa7c   :  { %v2880_v1 = vpop.f32.mrf.mxu1 }
 0xa7e   :  { %v4187_v3 = vpop.f32.mrf.mxu1 }
 0xa80   :  { %v3048_v4 = vpop.f32.mrf.mxu1 }
 0xa81   :  { %3387 = vrot.lane.b32.xlu0 %v3048_v4, %s4677_s29  ;;  %v3895_v4 = vld [vmem:[#allocation19] ss:$0 sm:$0xff] }
 0xa82   :  { %v4197_v2 = vpop.f32.mrf.mxu1 }
 0xa84   :  { %v3215_v8 = vpop.f32.mrf.mxu1 }
 0xa85   :  { %3391 = vrot.lane.b32.xlu0 %v3215_v8, %s4702_s17 }
 0xa86   :  { %v4207_v9 = vpop.f32.mrf.mxu1 }
 0xa88   :  { %v3382_v12 = vpop.f32.mrf.mxu1 }
 0xa89   :  { %3395 = vrot.lane.b32.xlu1 %v3382_v12, %s4703_s24 }
 0xa8a   :  { %v4217_v13 = vpop.f32.mrf.mxu1 }
 0xab6   :  { %v2708_v14 = vpop.permute.xlu0 %2707 }
 0xab7   :  { %v2718_v16 = vsel %vm339_vm2, %v2200_v51, %v2708_v14 }
 0xaba   :  { %v2712_v15 = vpop.permute.xlu1 %2711 }
 0xabb   :  { %v2719_v17 = vsel %vm1017_vm3, %v2718_v16, %v2712_v15  ;;  %v3650_v15 = vld [vmem:[%s5376_s20 + $0x18] sm:$0xff]  ;;  %v3649_v16 = vld [vmem:[%s5376_s20 + $0x10] sm:$0xff] }
 0xaeb   :  { %v2716_v5 = vpop.permute.xlu1 %2715 }
 0xaec   :  { %v2720_v18 = vsel %vm1019_vm4, %v2719_v17, %v2716_v5  ;;  %v3648_v17 = vld [vmem:[%s5376_s20 + $0x8] sm:$0xff]  ;;  %v3647_v5 = vld [vmem:[%s5376_s20] sm:$0xff] }
 0xaed   :  { %4226 = vmatprep.mubr.msk.f32.mxu0 %vm253_vm0, %v2720_v18  ;;  %v3896_v18 = vld [vmem:[#allocation22] ss:$0 sm:$0xff] }
 0xaf3   :  { %v3388_v19 = vpop.permute.xlu0 %3387 }
 0xaf4   :  { %v3398_v21 = vsel %vm339_vm2, %v2880_v1, %v3388_v19  ;;  %v3894_v1 = vld [vmem:[#allocation17] ss:$0 sm:$0xff] }
 0xaf7   :  { %v3392_v20 = vpop.permute.xlu0 %3391 }
 0xaf8   :  { %v3399_v22 = vsel %vm1017_vm3, %v3398_v21, %v3392_v20 }
 0xafb   :  { %v3396_v10 = vpop.permute.xlu1 %3395 }
 0xafc   :  { %v3400_v23 = vsel %vm1019_vm4, %v3399_v22, %v3396_v10 }
 0xafd   :  { %4227 = vmatmul.mubr.msk.f32.vlgmr.msra.gmra.mxu0 %vm253_vm0, %v3400_v23 }
 0xafe   :  { %4241 = vmatpush3.msra.mxu0 %v3654_v46 }
 0xaff   :  { %4242 = vmatprep.subr.mxu0 %v3653_v47 }
 0xb00   :  { %4243 = vmatpush3.msra.mxu0 %v3653_v47 }
 0xb01   :  { %4244 = vmatprep.subr.mxu0 %v3652_v48 }
 0xb02   :  { %4245 = vmatpush3.msra.mxu0 %v3652_v48 }
 0xb03   :  { %4246 = vmatprep.subr.mxu0 %v3651_v49 }
 0xb04   :  { %4247 = vmatpush3.msra.mxu0 %v3651_v49 }
 0xb05   :  { %4248 = vmatprep.subr.mxu0 %v3650_v15 }
 0xb06   :  { %4249 = vmatpush3.msra.mxu0 %v3650_v15 }
 0xb07   :  { %4250 = vmatprep.subr.mxu0 %v3649_v16 }
 0xb08   :  { %4251 = vmatpush3.msra.mxu0 %v3649_v16 }
 0xb09   :  { %4252 = vmatprep.subr.mxu0 %v3648_v17 }
 0xb0a   :  { %4253 = vmatpush3.msra.mxu0 %v3648_v17 }
 0xb0b   :  { %4254 = vmatprep.subr.mxu0 %v3647_v5 }
 0xb0c   :  { %4255 = vmatpush3.msra.mxu0 %v3647_v5 }
 0xbbd   :  { %v4228_v25 = vpop.f32.mrf.mxu0 }
 0xbbe   :  { %v3490_v26 = vadd.f32 %v4228_v25, %v3891_v24 }
 0xbbf   :  { %v3484_v27 = vpop.f32.mrf.mxu0 }
 0xbc0   :  { %v3485_v28 = vadd.f32 %v3891_v24, %v3484_v27  ;;  %v3494_v29 = vadd.f32 %v3490_v26, %v5160_v50  ;;  %v3899_v24 = vld [vmem:[%s5377_s21] ss:$0 sm:$0xff] }
 0xbc2   :  { %v3500_v30 = vsel %vm253_vm0, %v3494_v29, 0.0  ;;  %v3493_v31 = vadd.f32 %v3485_v28, %v5155_v45 }
 0xbc3   :  { %3501 = vadd.xlane.f32.xlu1 %v3500_v30 }
 0xbc4   :  { %v3497_v32 = vsel %vm253_vm0, %v3493_v31, 0.0 }
 0xbc5   :  { %3498 = vadd.xlane.f32.xlu0 %v3497_v32 }
 0xc4c   :  { %v3502_v33 = vpop.xlane.xlu1 %3501 }
 0xc4d   :  { %v3504_v34 = vmul.f32 0.03125, %v3502_v33 }
 0xc4e   :  { %v3499_v35 = vpop.xlane.xlu0 %3498 }
 0xc4f   :  { %v3503_v36 = vmul.f32 0.03125, %v3499_v35  ;;  %v5302_v37 = vsub.f32 %v3494_v29, %v3504_v34 }
 0xc51   :  { %v3505_v38 = vsub.f32 %v3493_v31, %v3503_v36  ;;  %v3508_v50 = vmul.f32 %v5302_v37, %v5302_v37 }
 0xc53   :  { %v3507_v39 = vmul.f32 %v3505_v38, %v3505_v38  ;;  %v3512_v45 = vsel %vm253_vm0, %v3508_v50, 0.0 }
 0xc55   :  { %v3509_v40 = vsel %vm253_vm0, %v3507_v39, 0.0 }
 0xc56   :  { %3510 = vadd.xlane.f32.xlu0 %v3509_v40 }
 0xc5a   :  { %3513 = vadd.xlane.f32.xlu0 %v3512_v45 }
 0xcdf   :  { %v3511_v51 = vpop.xlane.xlu0 %3510 }
 0xce0   :  { %v3515_v52 = vmul.f32 0.03125, %v3511_v51 }
 0xce2   :  { %v3517_v7 = vadd.f32 1e-06, %v3515_v52 }
 0xce3   :  { %v3514_v53 = vpop.xlane.xlu0 %3513 }
 0xce4   :  { %4362 = vrsqrt.f32 %v3517_v7  ;;  %v3516_v55 = vmul.f32 0.03125, %v3514_v53  ;;  %vm3521_vm9 = vcmp.eq.f32.partialorder %v3517_v7, inf  ;;  %v3524_v11 = vand.u32 2147483648, %v3517_v7 }
 0xce5   :  { %vm3523_vm10 = vcmp.eq.f32.partialorder %v3517_v7, 0.0 }
 0xce6   :  { %v3518_v56 = vadd.f32 1e-06, %v3516_v55 }
 0xce8   :  { %4364 = vrsqrt.f32 %v3518_v56  ;;  %vm3528_vm11 = vcmp.eq.f32.partialorder %v3518_v56, inf  ;;  %v3531_v62 = vand.u32 2147483648, %v3518_v56  ;;  %vm3530_vm12 = vcmp.eq.f32.partialorder %v3518_v56, 0.0 }
 0xcf1   :  { %v4363_v57 = vpop.eup %4362 }
 0xcf2   :  { %v3520_v54 = vmul.f32 %v4363_v57, %v3517_v7 }
 0xcf4   :  { %v3522_v58 = vsel %vm3521_vm9, %v3517_v7, %v3520_v54 }
 0xcf5   :  { %v3525_v59 = vsel %vm3523_vm10, %v3524_v11, %v3522_v58  ;;  %v4365_v60 = vpop.eup %4364  ;;  %v3902_v58 = vld [vmem:[%s5378_s22] ss:$0 sm:$0xff] }
 0xcf6   :  { %4366 = vrcp.f32 %v3525_v59  ;;  %v3527_v61 = vmul.f32 %v4365_v60, %v3518_v56  ;;  %v3903_v60 = vld [vmem:[%s5379_s23] ss:$0 sm:$0xff] }
 0xcf8   :  { %v3529_v6 = vsel %vm3528_vm11, %v3518_v56, %v3527_v61 }
 0xcf9   :  { %v3532_v63 = vsel %vm3530_vm12, %v3531_v62, %v3529_v6 }
 0xcfa   :  { %4368 = vrcp.f32 %v3532_v63 }
 0xd03   :  { %v4367_v0 = vpop.eup %4366 }
 0xd04   :  { %v3534_v3 = vmul.f32 %v4367_v0, %v3505_v38 }
 0xd06   :  { %v3543_v2 = vmul.f32 %v3894_v1, %v3534_v3 }
 0xd07   :  { %v4369_v8 = vpop.eup %4368 }
 0xd08   :  { %v3551_v9 = vadd.f32 %v3895_v4, %v3543_v2  ;;  %v3536_v12 = vmul.f32 %v4369_v8, %v5302_v37 }
 0xd0a   :  { %4237 = vmatprep.mubr.msk.f32.mxu1 %vm253_vm0, %v3551_v9  ;;  %v3544_v13 = vmul.f32 %v3894_v1, %v3536_v12 }
 0xd0c   :  { %v3552_v14 = vadd.f32 %v3895_v4, %v3544_v13 }
 0xd0e   :  { %4238 = vmatmul.mubr.msk.f32.vlgmr.msra.gmra.mxu1 %vm253_vm0, %v3552_v14 }
 0xdce   :  { %v4239_v19 = vpop.f32.mrf.mxu1 }
 0xdcf   :  { %v3642_v20 = vadd.f32 %v4239_v19, %v3896_v18 }
 0xdd0   :  { %v3636_v21 = vpop.f32.mrf.mxu1 }
 0xdd1   :  { %v3637_v22 = vadd.f32 %v3896_v18, %v3636_v21  ;;  %v3646_v23 = vmax.f32 %v3642_v20, 0.0 }
 0xdd3   :  { %v3645_v10 = vmax.f32 %v3637_v22, 0.0 }
 0xdd5   :  { %4256 = vmatprep.mubr.msk.f32.mxu0 %vm3662_vm13, %v3645_v10 }
 0xdd6   :  { %4257 = vmatmul.mubr.msk.f32.vlgmr.msra.gmra.mxu0 %vm3662_vm13, %v3646_v23 }
 0xe96   :  { %v4258_v25 = vpop.f32.mrf.mxu0 }
 0xe97   :  { %v3741_v26 = vadd.f32 %v4258_v25, %v3899_v24 }
 0xe98   :  { %v3735_v27 = vpop.f32.mrf.mxu0 }
 0xe99   :  { %v3736_v28 = vadd.f32 %v3899_v24, %v3735_v27  ;;  %v3745_v29 = vadd.f32 %v3741_v26, %v3552_v14 }
 0xe9b   :  { %v3751_v30 = vsel %vm253_vm0, %v3745_v29, 0.0  ;;  %v3744_v31 = vadd.f32 %v3736_v28, %v3551_v9 }
 0xe9c   :  { %3752 = vadd.xlane.f32.xlu0 %v3751_v30 }
 0xe9d   :  { %v3748_v32 = vsel %vm253_vm0, %v3744_v31, 0.0 }
 0xe9e   :  { %3749 = vadd.xlane.f32.xlu1 %v3748_v32 }
 0xf25   :  { %v3753_v33 = vpop.xlane.xlu0 %3752 }
 0xf26   :  { %v3755_v34 = vmul.f32 0.03125, %v3753_v33 }
 0xf27   :  { %v3750_v35 = vpop.xlane.xlu1 %3749 }
 0xf28   :  { %v3757_v36 = vsub.f32 %v3745_v29, %v3755_v34  ;;  %v3754_v37 = vmul.f32 0.03125, %v3750_v35 }
 0xf2a   :  { %v3756_v38 = vsub.f32 %v3744_v31, %v3754_v37  ;;  %v3759_v39 = vmul.f32 %v3757_v36, %v3757_v36 }
 0xf2c   :  { %v3763_v40 = vsel %vm253_vm0, %v3759_v39, 0.0  ;;  %v3758_v50 = vmul.f32 %v3756_v38, %v3756_v38 }
 0xf2d   :  { %3764 = vadd.xlane.f32.xlu0 %v3763_v40 }
 0xf2e   :  { %v3760_v45 = vsel %vm253_vm0, %v3758_v50, 0.0 }
 0xf2f   :  { %3761 = vadd.xlane.f32.xlu1 %v3760_v45 }
 0xfb6   :  { %v3765_v41 = vpop.xlane.xlu0 %3764 }
 0xfb7   :  { %v3767_v42 = vmul.f32 0.03125, %v3765_v41 }
 0xfb8   :  { %v3762_v43 = vpop.xlane.xlu1 %3761 }
 0xfb9   :  { %v3769_v44 = vadd.f32 1e-06, %v3767_v42  ;;  %v3766_v46 = vmul.f32 0.03125, %v3762_v43 }
 0xfbb   :  { %4370 = vrsqrt.f32 %v3769_v44  ;;  %v3768_v47 = vadd.f32 1e-06, %v3766_v46  ;;  %vm3779_vm14 = vcmp.eq.f32.partialorder %v3769_v44, inf  ;;  %v3782_v51 = vand.u32 2147483648, %v3769_v44 }
 0xfbc   :  { %vm3781_vm15 = vcmp.eq.f32.partialorder %v3769_v44, 0.0 }
 0xfbd   :  { %4372 = vrsqrt.f32 %v3768_v47  ;;  %vm3772_vm1 = vcmp.eq.f32.partialorder %v3768_v47, inf  ;;  %v3775_v56 = vand.u32 2147483648, %v3768_v47  ;;  %vm3774_vm2 = vcmp.eq.f32.partialorder %v3768_v47, 0.0 }
 0xfc8   :  { %v4371_v48 = vpop.eup %4370 }
 0xfc9   :  { %v3778_v49 = vmul.f32 %v4371_v48, %v3769_v44 }
 0xfca   :  { %v4373_v52 = vpop.eup %4372 }
 0xfcb   :  { %v3780_v7 = vsel %vm3779_vm14, %v3769_v44, %v3778_v49  ;;  %v3771_v55 = vmul.f32 %v4373_v52, %v3768_v47 }
 0xfcc   :  { %v3783_v53 = vsel %vm3781_vm15, %v3782_v51, %v3780_v7 }
 0xfcd   :  { %4374 = vrcp.f32 %v3783_v53  ;;  %v3773_v57 = vsel %vm3772_vm1, %v3768_v47, %v3771_v55 }
 0xfce   :  { %v3776_v54 = vsel %vm3774_vm2, %v3775_v56, %v3773_v57 }
 0xfcf   :  { %4376 = vrcp.f32 %v3776_v54 }
 0xfda   :  { %v4375_v11 = vpop.eup %4374 }
 0xfdb   :  { %v3787_v59 = vmul.f32 %v4375_v11, %v3757_v36 }
 0xfdc   :  { %v4377_v61 = vpop.eup %4376 }
 0xfdd   :  { %v3795_v62 = vmul.f32 %v3902_v58, %v3787_v59  ;;  %v3785_v6 = vmul.f32 %v4377_v61, %v3756_v38 }
 0xfdf   :  { %v3803_v63 = vadd.f32 %v3903_v60, %v3795_v62  ;;  %v3794_v0 = vmul.f32 %v3902_v58, %v3785_v6 }
 0xfe1   :  { %3805 = vst.msk [vmem:[#allocation23 + $0x8] sm:$0xff] %vm253_vm0, %v3803_v63  ;;  %v3802_v1 = vadd.f32 %v3903_v60, %v3794_v0 }
 0xfe3   :  { %3804 = vst.msk [vmem:[#allocation23] sm:$0xff] %vm253_vm0, %v3802_v1 }
 0xfe4   :  { %4649 = shalt.err (!%p4646_p13)
}
 0xfe5   :  { %s5402_s27 = sld [smem:[#allocation41_spill]] }
 0xfeb   :  { %3817 = dma.vmem_to_hbm [thread:$0]  %s3812_s13, 256, %s5402_s27, [#allocation4], %s4676_s2, %s4676_s2, %s4677_s29  }
 0xfec   :  { %4672 = dma.done.wait [#allocation4], 256  }
 0xfed   :  { %4673 = vsyncadd [#allocation4], 4294967040 }
 0xfee   :  { %3821 = vsyncpa [#allocation3], 1 }
 0xfef   :  { %3822 = vsyncpa [#allocation6], 1 }
 0xff0   :  { %3823 = vsyncpa [#allocation9], 1 }
 0xff1   :  { %3824 = vsyncpa [#allocation12], 1 }
 0xff2   :  { %3825 = vsyncpa [#allocation15], 1 }
 0xff3   :  { %3826 = vsyncpa [#allocation18], 1 }
 0xff4   :  { %3827 = vsyncpa [#allocation21], 1 }
 0xff5   :  { %3828 = vsyncpa [#allocation4], 1 }

</bundles_post_ra>
